<compile_context>
chip_gen: v7x
topology: tpu7x:2x2x1
jax: 0.10.0
libtpu: 0.0.40
codegen_flags: <defaults>
</compile_context>

<pallas_src>
import functools

import jax
import jax.numpy as jnp
from jax import lax
from jax.experimental import pallas as pl
from jax.experimental.pallas import tpu as pltpu


def _silu(x):
    return x * jax.nn.sigmoid(x)


# ----------------------------------------------------------------------------
# Shared in-kernel body: GroupNorm + SiLU + 3x3 conv (bf16 MXU, f32 accumulate)
# ----------------------------------------------------------------------------
def _gn_silu_conv3x3(act_ref, gamma_ref, beta_ref, red_ref, bro_ref, w_ref,
                     pbuf, *, H, W, eps):
    """act_ref: (1, C, H*W) block. Returns f32 (H*W, Cout) conv accumulator."""
    C = act_ref.shape[1]
    G = red_ref.shape[1]
    Cg = C // G
    HW = H * W
    Cout = w_ref.shape[-1]

    x = act_ref[0].astype(jnp.float32).T                      # (HW, C)

    # ---- GroupNorm stats via small (C,G)/(G,C) matrices (no CxC mask) ----
    s = jnp.sum(x, axis=0, keepdims=True)                     # (1, C)
    ss = jnp.sum(x * x, axis=0, keepdims=True)                # (1, C)
    inv_n = 1.0 / float(HW * Cg)
    gmean = jnp.dot(s, red_ref[...], preferred_element_type=jnp.float32) * inv_n
    gmsq = jnp.dot(ss, red_ref[...], preferred_element_type=jnp.float32) * inv_n
    gvar = jnp.maximum(gmsq - gmean * gmean, 0.0)             # clamp E[x^2]-m^2
    ginv = lax.rsqrt(gvar + eps)                              # (1, G)
    mean_c = jnp.dot(gmean, bro_ref[...], preferred_element_type=jnp.float32)
    inv_c = jnp.dot(ginv, bro_ref[...], preferred_element_type=jnp.float32)

    # ---- folded affine (y = x*a + b) + SiLU, all f32 on the VPU ----
    a = inv_c * gamma_ref[...].astype(jnp.float32)            # (1, C)
    b = beta_ref[...].astype(jnp.float32) - mean_c * a        # (1, C)
    y = _silu(x * a + b)                                      # (HW, C)

    # ---- in-kernel halo: zero-bordered VMEM scratch (no host-side jnp.pad) ----
    pbuf[...] = jnp.zeros_like(pbuf)
    pbuf[1:H + 1, 1:W + 1, :] = y.reshape(H, W, C)

    # ---- 3x3 conv: nine taps, bf16 operands on the MXU, f32 accumulation ----
    acc = jnp.zeros((HW, Cout), jnp.float32)
    for dy in range(3):
        for dx in range(3):
            patch = pbuf[dy:dy + H, dx:dx + W, :].reshape(HW, C)
            acc += jnp.dot(patch.astype(jnp.bfloat16), w_ref[dy, dx],
                           preferred_element_type=jnp.float32)
    return acc


# ----------------------------------------------------------------------------
# Stage 1: GN1 + SiLU + conv1 + bias + time embedding   (one grid step / batch)
# ----------------------------------------------------------------------------
def stage1_kernel(x_ref, g_ref, b_ref, red_ref, bro_ref, w_ref, cb_ref,
                  t_ref, tw_ref, tb_ref, o_ref, pbuf, *, H, W, eps):
    acc = _gn_silu_conv3x3(x_ref, g_ref, b_ref, red_ref, bro_ref, w_ref, pbuf,
                           H=H, W=W, eps=eps)
    # time embedding: silu(t) @ W_t + b_t (tiny; kept exact in f32)
    t = _silu(t_ref[0].astype(jnp.float32))                   # (1, T)
    temb = jnp.dot(t, tw_ref[...].astype(jnp.float32),
                   preferred_element_type=jnp.float32) + tb_ref[...].astype(jnp.float32)
    acc = acc + cb_ref[...].astype(jnp.float32) + temb        # (HW, Cout)
    o_ref[0] = acc.T.astype(o_ref.dtype)                      # lane-dense (Cout, HW)


# ----------------------------------------------------------------------------
# Stage 2: GN2 + SiLU + conv2 + bias + shortcut (fused residual add)
# ----------------------------------------------------------------------------
def stage2_proj_kernel(h_ref, g_ref, b_ref, red_ref, bro_ref, w_ref, cb_ref,
                       x_ref, wsc_ref, bsc_ref, o_ref, pbuf, *, H, W, eps):
    acc = _gn_silu_conv3x3(h_ref, g_ref, b_ref, red_ref, bro_ref, w_ref, pbuf,
                           H=H, W=W, eps=eps)
    acc = acc + cb_ref[...].astype(jnp.float32)
    xs = x_ref[0].astype(jnp.float32).T                       # (HW, Cin)
    sc = jnp.dot(xs.astype(jnp.bfloat16), wsc_ref[...],
                 preferred_element_type=jnp.float32) + bsc_ref[...].astype(jnp.float32)
    o_ref[0] = (acc + sc).T.astype(o_ref.dtype)               # lane-dense (Cout, HW)


def stage2_identity_kernel(h_ref, g_ref, b_ref, red_ref, bro_ref, w_ref, cb_ref,
                           x_ref, o_ref, pbuf, *, H, W, eps):
    acc = _gn_silu_conv3x3(h_ref, g_ref, b_ref, red_ref, bro_ref, w_ref, pbuf,
                           H=H, W=W, eps=eps)
    acc = acc + cb_ref[...].astype(jnp.float32)
    xs = x_ref[0].astype(jnp.float32).T                       # identity shortcut: no matmul
    o_ref[0] = (acc + xs).T.astype(o_ref.dtype)


# ----------------------------------------------------------------------------
# Wrapper (layout glue only: free reshapes, no pads, no transposes)
# ----------------------------------------------------------------------------
def _group_matrices(C, G):
    gid = jnp.arange(C, dtype=jnp.int32) // (C // G)
    R = (gid[:, None] == jnp.arange(G, dtype=jnp.int32)[None, :]).astype(jnp.float32)
    return R, R.T                                             # (C, G), (G, C)


def residual_block_forward(params, x_nchw, t, num_groups=8, eps=1e-5):
    N, Cin, H, W = x_nchw.shape
    HW = H * W
    Cout = params["w1"].shape[-1]
    T = t.shape[1]
    G = num_groups

    x_cl = x_nchw.reshape(N, Cin, HW)     # channel-major, lane-dense (free reshape)
    t3 = t.reshape(N, 1, T)
    R1, B1 = _group_matrices(Cin, G)
    R2, B2 = _group_matrices(Cout, G)
    w1 = params["w1"].astype(jnp.bfloat16)   # bf16 MXU operands (f32 accumulate)
    w2 = params["w2"].astype(jnp.bfloat16)

    cparams = pltpu.CompilerParams(dimension_semantics=("parallel",),
                                   vmem_limit_bytes=32 * 1024 * 1024)
    const = lambda n: (0, 0)
    const4 = lambda n: (0, 0, 0, 0)

    # ---- stage 1 ----
    h_cl = pl.pallas_call(
        functools.partial(stage1_kernel, H=H, W=W, eps=eps),
        out_shape=jax.ShapeDtypeStruct((N, Cout, HW), jnp.float32),
        grid=(N,),
        in_specs=[
            pl.BlockSpec((1, Cin, HW), lambda n: (n, 0, 0)),
            pl.BlockSpec((1, Cin), const),
            pl.BlockSpec((1, Cin), const),
            pl.BlockSpec((Cin, G), const),
            pl.BlockSpec((G, Cin), const),
            pl.BlockSpec((3, 3, Cin, Cout), const4),
            pl.BlockSpec((1, Cout), const),
            pl.BlockSpec((1, 1, T), lambda n: (n, 0, 0)),
            pl.BlockSpec((T, Cout), const),
            pl.BlockSpec((1, Cout), const),
        ],
        out_specs=pl.BlockSpec((1, Cout, HW), lambda n: (n, 0, 0)),
        scratch_shapes=[pltpu.VMEM((H + 2, W + 2, Cin), jnp.float32)],
        compiler_params=cparams,
    )(x_cl, params["gn1_gamma"].reshape(1, Cin), params["gn1_beta"].reshape(1, Cin),
      R1, B1, w1, params["b1"].reshape(1, Cout),
      t3, params["tw"], params["tb"].reshape(1, Cout))

    # ---- stage 2 ----
    common_in_specs = [
        pl.BlockSpec((1, Cout, HW), lambda n: (n, 0, 0)),
        pl.BlockSpec((1, Cout), const),
        pl.BlockSpec((1, Cout), const),
        pl.BlockSpec((Cout, G), const),
        pl.BlockSpec((G, Cout), const),
        pl.BlockSpec((3, 3, Cout, Cout), const4),
        pl.BlockSpec((1, Cout), const),
        pl.BlockSpec((1, Cin, HW), lambda n: (n, 0, 0)),
    ]
    common_args = (h_cl, params["gn2_gamma"].reshape(1, Cout),
                   params["gn2_beta"].reshape(1, Cout), R2, B2, w2,
                   params["b2"].reshape(1, Cout), x_cl)

    if "wsc" in params:          # 1x1 projection shortcut (Cin != Cout)
        out_cl = pl.pallas_call(
            functools.partial(stage2_proj_kernel, H=H, W=W, eps=eps),
            out_shape=jax.ShapeDtypeStruct((N, Cout, HW), jnp.float32),
            grid=(N,),
            in_specs=common_in_specs + [
                pl.BlockSpec((Cin, Cout), const),
                pl.BlockSpec((1, Cout), const),
            ],
            out_specs=pl.BlockSpec((1, Cout, HW), lambda n: (n, 0, 0)),
            scratch_shapes=[pltpu.VMEM((H + 2, W + 2, Cout), jnp.float32)],
            compiler_params=cparams,
        )(*common_args, params["wsc"].astype(jnp.bfloat16),
          params["bsc"].reshape(1, Cout))
    else:                        # identity shortcut (Cin == Cout): skip 1x1 matmul
        out_cl = pl.pallas_call(
            functools.partial(stage2_identity_kernel, H=H, W=W, eps=eps),
            out_shape=jax.ShapeDtypeStruct((N, Cout, HW), jnp.float32),
            grid=(N,),
            in_specs=common_in_specs,
            out_specs=pl.BlockSpec((1, Cout, HW), lambda n: (n, 0, 0)),
            scratch_shapes=[pltpu.VMEM((H + 2, W + 2, Cout), jnp.float32)],
            compiler_params=cparams,
        )(*common_args)

    return out_cl.reshape(N, Cout, H, W)      # NCHW, free reshape


# ----------------------------------------------------------------------------
# Parameters and pure-JAX reference (PyTorch semantics) for verification
# ----------------------------------------------------------------------------
def init_params(key, in_channels, out_channels, t_dim):
    ks = jax.random.split(key, 8)

    def u(k, shape, fan_in):
        bound = 1.0 / jnp.sqrt(fan_in)
        return jax.random.uniform(k, shape, jnp.float32, -bound, bound)

    p = {
        "gn1_gamma": jnp.ones((in_channels,), jnp.float32),
        "gn1_beta": jnp.zeros((in_channels,), jnp.float32),
        "w1": u(ks[0], (3, 3, in_channels, out_channels), 9 * in_channels),
        "b1": u(ks[1], (out_channels,), 9 * in_channels),
        "tw": u(ks[2], (t_dim, out_channels), t_dim),
        "tb": u(ks[3], (out_channels,), t_dim),
        "gn2_gamma": jnp.ones((out_channels,), jnp.float32),
        "gn2_beta": jnp.zeros((out_channels,), jnp.float32),
        "w2": u(ks[4], (3, 3, out_channels, out_channels), 9 * out_channels),
        "b2": u(ks[5], (out_channels,), 9 * out_channels),
    }
    if in_channels != out_channels:
        p["wsc"] = u(ks[6], (in_channels, out_channels), in_channels)
        p["bsc"] = u(ks[7], (out_channels,), in_channels)
    return p


def ref_forward(params, x, t):
    def gn(x, gamma, beta, G, eps=1e-5):
        N, C, H, W = x.shape
        xg = x.reshape(N, G, C // G, H, W)
        mean = xg.mean(axis=(2, 3, 4), keepdims=True)
        var = xg.var(axis=(2, 3, 4), keepdims=True)
        xn = ((xg - mean) / jnp.sqrt(var + eps)).reshape(N, C, H, W)
        return xn * gamma[None, :, None, None] + beta[None, :, None, None]

    def conv(x, w, b, pad):
        y = lax.conv_general_dilated(x, w, (1, 1), [(pad, pad), (pad, pad)],
                                     dimension_numbers=("NCHW", "HWIO", "NCHW"))
        return y + b[None, :, None, None]

    h = conv(_silu(gn(x, params["gn1_gamma"], params["gn1_beta"], 8)),
             params["w1"], params["b1"], 1)
    h = h + (_silu(t) @ params["tw"] + params["tb"])[:, :, None, None]
    h = conv(_silu(gn(h, params["gn2_gamma"], params["gn2_beta"], 8)),
             params["w2"], params["b2"], 1)
    if "wsc" in params:
        Cin, Cout = params["wsc"].shape
        sc = conv(x, params["wsc"].reshape(1, 1, Cin, Cout), params["bsc"], 0)
    else:
        sc = x
    return h + sc


if __name__ == "__main__":
    key = jax.random.PRNGKey(0)
    configs = [
        # (N, Cin, Cout, T, H, W)
        (2, 8, 16, 32, 16, 16),    # projection shortcut (Cin != Cout)
        (2, 16, 16, 32, 16, 16),   # identity shortcut  (Cin == Cout)
    ]
    for (N, Cin, Cout, T, H, W) in configs:
        key, kx, kt, kp = jax.random.split(key, 4)
        x = jax.random.normal(kx, (N, Cin, H, W), jnp.float32)
        t = jax.random.normal(kt, (N, T), jnp.float32)
        params = init_params(kp, Cin, Cout, T)

        out = jax.block_until_ready(residual_block_forward(params, x, t))
        ref = jax.block_until_ready(ref_forward(params, x, t))

        assert out.shape == (N, Cout, H, W)
        err = float(jnp.max(jnp.abs(out - ref)))
        # bf16 MXU operands (f32 accumulate) -> tiny rounding vs the f32 reference
        assert err < 5e-2, f"mismatch vs reference: max abs err = {err}"
    print("KERNEL_OK")
</pallas_src>

<mosaic_0001>
module attributes {stable_mosaic.version = 11 : i64} {
  func.func @stage1_kernel(%arg0: i32, %arg1: memref<1x8x256xf32, #tpu.memory_space<vmem>>, %arg2: memref<1x8xf32, #tpu.memory_space<vmem>>, %arg3: memref<1x8xf32, #tpu.memory_space<vmem>>, %arg4: memref<8x8xf32, #tpu.memory_space<vmem>>, %arg5: memref<8x8xf32, #tpu.memory_space<vmem>>, %arg6: memref<3x3x8x16xbf16, #tpu.memory_space<vmem>>, %arg7: memref<1x16xf32, #tpu.memory_space<vmem>>, %arg8: memref<1x1x32xf32, #tpu.memory_space<vmem>>, %arg9: memref<32x16xf32, #tpu.memory_space<vmem>>, %arg10: memref<1x16xf32, #tpu.memory_space<vmem>>, %arg11: memref<1x16x256xf32, #tpu.memory_space<vmem>>, %arg12: memref<18x18x8xf32, #tpu.memory_space<vmem>>) attributes {dimension_semantics = [#tpu.dimension_semantics<parallel>], iteration_bounds = array<i64: 2>, scalar_prefetch = 0 : i64, scratch_operands = 1 : i64, tpu.core_type = #tpu.core_type<tc>, window_params = [{transform_indices = @transform_0, window_bounds = array<i64: 1, 8, 256>}, {pipeline_mode = #tpu.pipeline_mode<synchronous>, transform_indices = @transform_1, window_bounds = array<i64: 1, 8>}, {pipeline_mode = #tpu.pipeline_mode<synchronous>, transform_indices = @transform_2, window_bounds = array<i64: 1, 8>}, {pipeline_mode = #tpu.pipeline_mode<synchronous>, transform_indices = @transform_3, window_bounds = array<i64: 8, 8>}, {pipeline_mode = #tpu.pipeline_mode<synchronous>, transform_indices = @transform_4, window_bounds = array<i64: 8, 8>}, {pipeline_mode = #tpu.pipeline_mode<synchronous>, transform_indices = @transform_5, window_bounds = array<i64: 3, 3, 8, 16>}, {pipeline_mode = #tpu.pipeline_mode<synchronous>, transform_indices = @transform_6, window_bounds = array<i64: 1, 16>}, {transform_indices = @transform_7, window_bounds = array<i64: 1, 1, 32>}, {pipeline_mode = #tpu.pipeline_mode<synchronous>, transform_indices = @transform_8, window_bounds = array<i64: 32, 16>}, {pipeline_mode = #tpu.pipeline_mode<synchronous>, transform_indices = @transform_9, window_bounds = array<i64: 1, 16>}, {transform_indices = @transform_10, window_bounds = array<i64: 1, 16, 256>}]} {
    %c0 = arith.constant 0 : index
    %c0_0 = arith.constant 0 : index
    %c0_1 = arith.constant 0 : index
    %0 = vector.load %arg1[%c0, %c0_0, %c0_1] : memref<1x8x256xf32, #tpu.memory_space<vmem>>, vector<1x8x256xf32>
    %1 = vector.shape_cast %0 : vector<1x8x256xf32> to vector<8x256xf32>
    %2 = tpu.transpose %1, [1, 0] : vector<8x256xf32> -> vector<256x8xf32>
    %cst = arith.constant dense<0.000000e+00> : vector<8xf32>
    %3 = vector.multi_reduction <add>, %2, %cst [0] : vector<256x8xf32> to vector<8xf32>
    %4 = vector.shape_cast %3 : vector<8xf32> to vector<1x8xf32>
    %5 = arith.mulf %2, %2 : vector<256x8xf32>
    %cst_2 = arith.constant dense<0.000000e+00> : vector<8xf32>
    %6 = vector.multi_reduction <add>, %5, %cst_2 [0] : vector<256x8xf32> to vector<8xf32>
    %7 = vector.shape_cast %6 : vector<8xf32> to vector<1x8xf32>
    %c0_3 = arith.constant 0 : index
    %c0_4 = arith.constant 0 : index
    %8 = vector.load %arg4[%c0_3, %c0_4] : memref<8x8xf32, #tpu.memory_space<vmem>>, vector<8x8xf32>
    %cst_5 = arith.constant dense<0.000000e+00> : vector<1x8xf32>
    %9 = tpu.matmul %4, %8, %cst_5 {dimension_numbers = #tpu.dot_dimension_numbers<[1], [0], [0], [1], [0, 0, 1, 1], [], []>} : vector<1x8xf32>, vector<8x8xf32>, vector<1x8xf32> -> vector<1x8xf32>
    %cst_6 = arith.constant 3.906250e-03 : f32
    %10 = vector.broadcast %cst_6 : f32 to vector<1x8xf32>
    %11 = arith.mulf %9, %10 : vector<1x8xf32>
    %c0_7 = arith.constant 0 : index
    %c0_8 = arith.constant 0 : index
    %12 = vector.load %arg4[%c0_7, %c0_8] : memref<8x8xf32, #tpu.memory_space<vmem>>, vector<8x8xf32>
    %cst_9 = arith.constant dense<0.000000e+00> : vector<1x8xf32>
    %13 = tpu.matmul %7, %12, %cst_9 {dimension_numbers = #tpu.dot_dimension_numbers<[1], [0], [0], [1], [0, 0, 1, 1], [], []>} : vector<1x8xf32>, vector<8x8xf32>, vector<1x8xf32> -> vector<1x8xf32>
    %cst_10 = arith.constant 3.906250e-03 : f32
    %14 = vector.broadcast %cst_10 : f32 to vector<1x8xf32>
    %15 = arith.mulf %13, %14 : vector<1x8xf32>
    %16 = arith.mulf %11, %11 : vector<1x8xf32>
    %17 = arith.subf %15, %16 : vector<1x8xf32>
    %cst_11 = arith.constant 0.000000e+00 : f32
    %18 = vector.broadcast %cst_11 : f32 to vector<1x8xf32>
    %19 = arith.maximumf %17, %18 : vector<1x8xf32>
    %cst_12 = arith.constant 9.99999974E-6 : f32
    %20 = vector.broadcast %cst_12 : f32 to vector<1x8xf32>
    %21 = arith.addf %19, %20 : vector<1x8xf32>
    %22 = math.rsqrt %21 : vector<1x8xf32>
    %c0_13 = arith.constant 0 : index
    %c0_14 = arith.constant 0 : index
    %23 = vector.load %arg5[%c0_13, %c0_14] : memref<8x8xf32, #tpu.memory_space<vmem>>, vector<8x8xf32>
    %cst_15 = arith.constant dense<0.000000e+00> : vector<1x8xf32>
    %24 = tpu.matmul %11, %23, %cst_15 {dimension_numbers = #tpu.dot_dimension_numbers<[1], [0], [0], [1], [0, 0, 1, 1], [], []>} : vector<1x8xf32>, vector<8x8xf32>, vector<1x8xf32> -> vector<1x8xf32>
    %c0_16 = arith.constant 0 : index
    %c0_17 = arith.constant 0 : index
    %25 = vector.load %arg5[%c0_16, %c0_17] : memref<8x8xf32, #tpu.memory_space<vmem>>, vector<8x8xf32>
    %cst_18 = arith.constant dense<0.000000e+00> : vector<1x8xf32>
    %26 = tpu.matmul %22, %25, %cst_18 {dimension_numbers = #tpu.dot_dimension_numbers<[1], [0], [0], [1], [0, 0, 1, 1], [], []>} : vector<1x8xf32>, vector<8x8xf32>, vector<1x8xf32> -> vector<1x8xf32>
    %c0_19 = arith.constant 0 : index
    %c0_20 = arith.constant 0 : index
    %27 = vector.load %arg2[%c0_19, %c0_20] : memref<1x8xf32, #tpu.memory_space<vmem>>, vector<1x8xf32>
    %28 = arith.mulf %26, %27 : vector<1x8xf32>
    %c0_21 = arith.constant 0 : index
    %c0_22 = arith.constant 0 : index
    %29 = vector.load %arg3[%c0_21, %c0_22] : memref<1x8xf32, #tpu.memory_space<vmem>>, vector<1x8xf32>
    %30 = arith.mulf %24, %28 : vector<1x8xf32>
    %31 = arith.subf %29, %30 : vector<1x8xf32>
    %32 = vector.broadcast %28 : vector<1x8xf32> to vector<256x8xf32>
    %33 = arith.mulf %2, %32 : vector<256x8xf32>
    %34 = vector.broadcast %31 : vector<1x8xf32> to vector<256x8xf32>
    %35 = arith.addf %33, %34 : vector<256x8xf32>
    %36 = arith.negf %35 : vector<256x8xf32>
    %37 = math.exp %36 : vector<256x8xf32>
    %cst_23 = arith.constant 1.000000e+00 : f32
    %38 = vector.broadcast %cst_23 : f32 to vector<256x8xf32>
    %39 = arith.addf %38, %37 : vector<256x8xf32>
    %40 = arith.divf %38, %39 : vector<256x8xf32>
    %41 = arith.mulf %35, %40 : vector<256x8xf32>
    %cst_24 = arith.constant 0.000000e+00 : f32
    %42 = vector.broadcast %cst_24 : f32 to vector<18x18x8xf32>
    %c0_25 = arith.constant 0 : index
    %c0_26 = arith.constant 0 : index
    %c0_27 = arith.constant 0 : index
    %43 = vector.load %arg12[%c0_25, %c0_26, %c0_27] : memref<18x18x8xf32, #tpu.memory_space<vmem>>, vector<18x18x8xf32>
    tpu.vector_store %arg12[%c0_25, %c0_26, %c0_27], %42 {strides = array<i32>} : memref<18x18x8xf32, #tpu.memory_space<vmem>>, vector<18x18x8xf32>,
    %44 = vector.shape_cast %41 : vector<256x8xf32> to vector<16x16x8xf32>
    %c1 = arith.constant 1 : index
    %c1_28 = arith.constant 1 : index
    %c0_29 = arith.constant 0 : index
    %45 = vector.load %arg12[%c1, %c1_28, %c0_29] : memref<18x18x8xf32, #tpu.memory_space<vmem>>, vector<16x16x8xf32>
    tpu.vector_store %arg12[%c1, %c1_28, %c0_29], %44 {strides = array<i32>} : memref<18x18x8xf32, #tpu.memory_space<vmem>>, vector<16x16x8xf32>,
    %cst_30 = arith.constant 0.000000e+00 : f32
    %46 = vector.broadcast %cst_30 : f32 to vector<256x16xf32>
    %c0_31 = arith.constant 0 : index
    %c0_32 = arith.constant 0 : index
    %c0_33 = arith.constant 0 : index
    %47 = vector.load %arg12[%c0_31, %c0_32, %c0_33] : memref<18x18x8xf32, #tpu.memory_space<vmem>>, vector<16x16x8xf32>
    %48 = vector.shape_cast %47 : vector<16x16x8xf32> to vector<256x8xf32>
    %49 = arith.truncf %48 : vector<256x8xf32> to vector<256x8xbf16>
    %c0_34 = arith.constant 0 : index
    %c0_35 = arith.constant 0 : index
    %c0_36 = arith.constant 0 : index
    %c0_37 = arith.constant 0 : index
    %50 = vector.load %arg6[%c0_34, %c0_35, %c0_36, %c0_37] : memref<3x3x8x16xbf16, #tpu.memory_space<vmem>>, vector<1x1x8x16xbf16>
    %51 = vector.shape_cast %50 : vector<1x1x8x16xbf16> to vector<8x16xbf16>
    %cst_38 = arith.constant dense<0.000000e+00> : vector<256x16xf32>
    %52 = tpu.matmul %49, %51, %cst_38 {dimension_numbers = #tpu.dot_dimension_numbers<[1], [0], [0], [1], [0, 0, 1, 1], [], []>} : vector<256x8xbf16>, vector<8x16xbf16>, vector<256x16xf32> -> vector<256x16xf32>
    %53 = arith.addf %46, %52 : vector<256x16xf32>
    %c0_39 = arith.constant 0 : index
    %c1_40 = arith.constant 1 : index
    %c0_41 = arith.constant 0 : index
    %54 = vector.load %arg12[%c0_39, %c1_40, %c0_41] : memref<18x18x8xf32, #tpu.memory_space<vmem>>, vector<16x16x8xf32>
    %55 = vector.shape_cast %54 : vector<16x16x8xf32> to vector<256x8xf32>
    %56 = arith.truncf %55 : vector<256x8xf32> to vector<256x8xbf16>
    %c0_42 = arith.constant 0 : index
    %c1_43 = arith.constant 1 : index
    %c0_44 = arith.constant 0 : index
    %c0_45 = arith.constant 0 : index
    %57 = vector.load %arg6[%c0_42, %c1_43, %c0_44, %c0_45] : memref<3x3x8x16xbf16, #tpu.memory_space<vmem>>, vector<1x1x8x16xbf16>
    %58 = vector.shape_cast %57 : vector<1x1x8x16xbf16> to vector<8x16xbf16>
    %cst_46 = arith.constant dense<0.000000e+00> : vector<256x16xf32>
    %59 = tpu.matmul %56, %58, %cst_46 {dimension_numbers = #tpu.dot_dimension_numbers<[1], [0], [0], [1], [0, 0, 1, 1], [], []>} : vector<256x8xbf16>, vector<8x16xbf16>, vector<256x16xf32> -> vector<256x16xf32>
    %60 = arith.addf %53, %59 : vector<256x16xf32>
    %c0_47 = arith.constant 0 : index
    %c2 = arith.constant 2 : index
    %c0_48 = arith.constant 0 : index
    %61 = vector.load %arg12[%c0_47, %c2, %c0_48] : memref<18x18x8xf32, #tpu.memory_space<vmem>>, vector<16x16x8xf32>
    %62 = vector.shape_cast %61 : vector<16x16x8xf32> to vector<256x8xf32>
    %63 = arith.truncf %62 : vector<256x8xf32> to vector<256x8xbf16>
    %c0_49 = arith.constant 0 : index
    %c2_50 = arith.constant 2 : index
    %c0_51 = arith.constant 0 : index
    %c0_52 = arith.constant 0 : index
    %64 = vector.load %arg6[%c0_49, %c2_50, %c0_51, %c0_52] : memref<3x3x8x16xbf16, #tpu.memory_space<vmem>>, vector<1x1x8x16xbf16>
    %65 = vector.shape_cast %64 : vector<1x1x8x16xbf16> to vector<8x16xbf16>
    %cst_53 = arith.constant dense<0.000000e+00> : vector<256x16xf32>
    %66 = tpu.matmul %63, %65, %cst_53 {dimension_numbers = #tpu.dot_dimension_numbers<[1], [0], [0], [1], [0, 0, 1, 1], [], []>} : vector<256x8xbf16>, vector<8x16xbf16>, vector<256x16xf32> -> vector<256x16xf32>
    %67 = arith.addf %60, %66 : vector<256x16xf32>
    %c1_54 = arith.constant 1 : index
    %c0_55 = arith.constant 0 : index
    %c0_56 = arith.constant 0 : index
    %68 = vector.load %arg12[%c1_54, %c0_55, %c0_56] : memref<18x18x8xf32, #tpu.memory_space<vmem>>, vector<16x16x8xf32>
    %69 = vector.shape_cast %68 : vector<16x16x8xf32> to vector<256x8xf32>
    %70 = arith.truncf %69 : vector<256x8xf32> to vector<256x8xbf16>
    %c1_57 = arith.constant 1 : index
    %c0_58 = arith.constant 0 : index
    %c0_59 = arith.constant 0 : index
    %c0_60 = arith.constant 0 : index
    %71 = vector.load %arg6[%c1_57, %c0_58, %c0_59, %c0_60] : memref<3x3x8x16xbf16, #tpu.memory_space<vmem>>, vector<1x1x8x16xbf16>
    %72 = vector.shape_cast %71 : vector<1x1x8x16xbf16> to vector<8x16xbf16>
    %cst_61 = arith.constant dense<0.000000e+00> : vector<256x16xf32>
    %73 = tpu.matmul %70, %72, %cst_61 {dimension_numbers = #tpu.dot_dimension_numbers<[1], [0], [0], [1], [0, 0, 1, 1], [], []>} : vector<256x8xbf16>, vector<8x16xbf16>, vector<256x16xf32> -> vector<256x16xf32>
    %74 = arith.addf %67, %73 : vector<256x16xf32>
    %c1_62 = arith.constant 1 : index
    %c1_63 = arith.constant 1 : index
    %c0_64 = arith.constant 0 : index
    %75 = vector.load %arg12[%c1_62, %c1_63, %c0_64] : memref<18x18x8xf32, #tpu.memory_space<vmem>>, vector<16x16x8xf32>
    %76 = vector.shape_cast %75 : vector<16x16x8xf32> to vector<256x8xf32>
    %77 = arith.truncf %76 : vector<256x8xf32> to vector<256x8xbf16>
    %c1_65 = arith.constant 1 : index
    %c1_66 = arith.constant 1 : index
    %c0_67 = arith.constant 0 : index
    %c0_68 = arith.constant 0 : index
    %78 = vector.load %arg6[%c1_65, %c1_66, %c0_67, %c0_68] : memref<3x3x8x16xbf16, #tpu.memory_space<vmem>>, vector<1x1x8x16xbf16>
    %79 = vector.shape_cast %78 : vector<1x1x8x16xbf16> to vector<8x16xbf16>
    %cst_69 = arith.constant dense<0.000000e+00> : vector<256x16xf32>
    %80 = tpu.matmul %77, %79, %cst_69 {dimension_numbers = #tpu.dot_dimension_numbers<[1], [0], [0], [1], [0, 0, 1, 1], [], []>} : vector<256x8xbf16>, vector<8x16xbf16>, vector<256x16xf32> -> vector<256x16xf32>
    %81 = arith.addf %74, %80 : vector<256x16xf32>
    %c1_70 = arith.constant 1 : index
    %c2_71 = arith.constant 2 : index
    %c0_72 = arith.constant 0 : index
    %82 = vector.load %arg12[%c1_70, %c2_71, %c0_72] : memref<18x18x8xf32, #tpu.memory_space<vmem>>, vector<16x16x8xf32>
    %83 = vector.shape_cast %82 : vector<16x16x8xf32> to vector<256x8xf32>
    %84 = arith.truncf %83 : vector<256x8xf32> to vector<256x8xbf16>
    %c1_73 = arith.constant 1 : index
    %c2_74 = arith.constant 2 : index
    %c0_75 = arith.constant 0 : index
    %c0_76 = arith.constant 0 : index
    %85 = vector.load %arg6[%c1_73, %c2_74, %c0_75, %c0_76] : memref<3x3x8x16xbf16, #tpu.memory_space<vmem>>, vector<1x1x8x16xbf16>
    %86 = vector.shape_cast %85 : vector<1x1x8x16xbf16> to vector<8x16xbf16>
    %cst_77 = arith.constant dense<0.000000e+00> : vector<256x16xf32>
    %87 = tpu.matmul %84, %86, %cst_77 {dimension_numbers = #tpu.dot_dimension_numbers<[1], [0], [0], [1], [0, 0, 1, 1], [], []>} : vector<256x8xbf16>, vector<8x16xbf16>, vector<256x16xf32> -> vector<256x16xf32>
    %88 = arith.addf %81, %87 : vector<256x16xf32>
    %c2_78 = arith.constant 2 : index
    %c0_79 = arith.constant 0 : index
    %c0_80 = arith.constant 0 : index
    %89 = vector.load %arg12[%c2_78, %c0_79, %c0_80] : memref<18x18x8xf32, #tpu.memory_space<vmem>>, vector<16x16x8xf32>
    %90 = vector.shape_cast %89 : vector<16x16x8xf32> to vector<256x8xf32>
    %91 = arith.truncf %90 : vector<256x8xf32> to vector<256x8xbf16>
    %c2_81 = arith.constant 2 : index
    %c0_82 = arith.constant 0 : index
    %c0_83 = arith.constant 0 : index
    %c0_84 = arith.constant 0 : index
    %92 = vector.load %arg6[%c2_81, %c0_82, %c0_83, %c0_84] : memref<3x3x8x16xbf16, #tpu.memory_space<vmem>>, vector<1x1x8x16xbf16>
    %93 = vector.shape_cast %92 : vector<1x1x8x16xbf16> to vector<8x16xbf16>
    %cst_85 = arith.constant dense<0.000000e+00> : vector<256x16xf32>
    %94 = tpu.matmul %91, %93, %cst_85 {dimension_numbers = #tpu.dot_dimension_numbers<[1], [0], [0], [1], [0, 0, 1, 1], [], []>} : vector<256x8xbf16>, vector<8x16xbf16>, vector<256x16xf32> -> vector<256x16xf32>
    %95 = arith.addf %88, %94 : vector<256x16xf32>
    %c2_86 = arith.constant 2 : index
    %c1_87 = arith.constant 1 : index
    %c0_88 = arith.constant 0 : index
    %96 = vector.load %arg12[%c2_86, %c1_87, %c0_88] : memref<18x18x8xf32, #tpu.memory_space<vmem>>, vector<16x16x8xf32>
    %97 = vector.shape_cast %96 : vector<16x16x8xf32> to vector<256x8xf32>
    %98 = arith.truncf %97 : vector<256x8xf32> to vector<256x8xbf16>
    %c2_89 = arith.constant 2 : index
    %c1_90 = arith.constant 1 : index
    %c0_91 = arith.constant 0 : index
    %c0_92 = arith.constant 0 : index
    %99 = vector.load %arg6[%c2_89, %c1_90, %c0_91, %c0_92] : memref<3x3x8x16xbf16, #tpu.memory_space<vmem>>, vector<1x1x8x16xbf16>
    %100 = vector.shape_cast %99 : vector<1x1x8x16xbf16> to vector<8x16xbf16>
    %cst_93 = arith.constant dense<0.000000e+00> : vector<256x16xf32>
    %101 = tpu.matmul %98, %100, %cst_93 {dimension_numbers = #tpu.dot_dimension_numbers<[1], [0], [0], [1], [0, 0, 1, 1], [], []>} : vector<256x8xbf16>, vector<8x16xbf16>, vector<256x16xf32> -> vector<256x16xf32>
    %102 = arith.addf %95, %101 : vector<256x16xf32>
    %c2_94 = arith.constant 2 : index
    %c2_95 = arith.constant 2 : index
    %c0_96 = arith.constant 0 : index
    %103 = vector.load %arg12[%c2_94, %c2_95, %c0_96] : memref<18x18x8xf32, #tpu.memory_space<vmem>>, vector<16x16x8xf32>
    %104 = vector.shape_cast %103 : vector<16x16x8xf32> to vector<256x8xf32>
    %105 = arith.truncf %104 : vector<256x8xf32> to vector<256x8xbf16>
    %c2_97 = arith.constant 2 : index
    %c2_98 = arith.constant 2 : index
    %c0_99 = arith.constant 0 : index
    %c0_100 = arith.constant 0 : index
    %106 = vector.load %arg6[%c2_97, %c2_98, %c0_99, %c0_100] : memref<3x3x8x16xbf16, #tpu.memory_space<vmem>>, vector<1x1x8x16xbf16>
    %107 = vector.shape_cast %106 : vector<1x1x8x16xbf16> to vector<8x16xbf16>
    %cst_101 = arith.constant dense<0.000000e+00> : vector<256x16xf32>
    %108 = tpu.matmul %105, %107, %cst_101 {dimension_numbers = #tpu.dot_dimension_numbers<[1], [0], [0], [1], [0, 0, 1, 1], [], []>} : vector<256x8xbf16>, vector<8x16xbf16>, vector<256x16xf32> -> vector<256x16xf32>
    %109 = arith.addf %102, %108 : vector<256x16xf32>
    %c0_102 = arith.constant 0 : index
    %c0_103 = arith.constant 0 : index
    %c0_104 = arith.constant 0 : index
    %110 = vector.load %arg8[%c0_102, %c0_103, %c0_104] : memref<1x1x32xf32, #tpu.memory_space<vmem>>, vector<1x1x32xf32>
    %111 = vector.shape_cast %110 : vector<1x1x32xf32> to vector<1x32xf32>
    %112 = arith.negf %111 : vector<1x32xf32>
    %113 = math.exp %112 : vector<1x32xf32>
    %cst_105 = arith.constant 1.000000e+00 : f32
    %114 = vector.broadcast %cst_105 : f32 to vector<1x32xf32>
    %115 = arith.addf %114, %113 : vector<1x32xf32>
    %116 = arith.divf %114, %115 : vector<1x32xf32>
    %117 = arith.mulf %111, %116 : vector<1x32xf32>
    %c0_106 = arith.constant 0 : index
    %c0_107 = arith.constant 0 : index
    %118 = vector.load %arg9[%c0_106, %c0_107] : memref<32x16xf32, #tpu.memory_space<vmem>>, vector<32x16xf32>
    %cst_108 = arith.constant dense<0.000000e+00> : vector<1x16xf32>
    %119 = tpu.matmul %117, %118, %cst_108 {dimension_numbers = #tpu.dot_dimension_numbers<[1], [0], [0], [1], [0, 0, 1, 1], [], []>} : vector<1x32xf32>, vector<32x16xf32>, vector<1x16xf32> -> vector<1x16xf32>
    %c0_109 = arith.constant 0 : index
    %c0_110 = arith.constant 0 : index
    %120 = vector.load %arg10[%c0_109, %c0_110] : memref<1x16xf32, #tpu.memory_space<vmem>>, vector<1x16xf32>
    %121 = arith.addf %119, %120 : vector<1x16xf32>
    %c0_111 = arith.constant 0 : index
    %c0_112 = arith.constant 0 : index
    %122 = vector.load %arg7[%c0_111, %c0_112] : memref<1x16xf32, #tpu.memory_space<vmem>>, vector<1x16xf32>
    %123 = vector.broadcast %122 : vector<1x16xf32> to vector<256x16xf32>
    %124 = arith.addf %109, %123 : vector<256x16xf32>
    %125 = vector.broadcast %121 : vector<1x16xf32> to vector<256x16xf32>
    %126 = arith.addf %124, %125 : vector<256x16xf32>
    %127 = tpu.transpose %126, [1, 0] : vector<256x16xf32> -> vector<16x256xf32>
    %c0_113 = arith.constant 0 : index
    %c0_114 = arith.constant 0 : index
    %c0_115 = arith.constant 0 : index
    %128 = vector.load %arg11[%c0_113, %c0_114, %c0_115] : memref<1x16x256xf32, #tpu.memory_space<vmem>>, vector<1x16x256xf32>
    %129 = vector.shape_cast %128 : vector<1x16x256xf32> to vector<16x256xf32>
    %130 = vector.shape_cast %127 : vector<16x256xf32> to vector<1x16x256xf32>
    tpu.vector_store %arg11[%c0_113, %c0_114, %c0_115], %130 {strides = array<i32>} : memref<1x16x256xf32, #tpu.memory_space<vmem>>, vector<1x16x256xf32>,
    return
  }
  func.func @transform_0(%arg0: i32) -> (i32, i32, i32) {
    %c0_i32 = arith.constant 0 : i32
    %c0_i32_0 = arith.constant 0 : i32
    %c0_i32_1 = arith.constant 0 : i32
    return %arg0, %c0_i32, %c0_i32_0 : i32, i32, i32
  }
  func.func @transform_1(%arg0: i32) -> (i32, i32) {
    %c0_i32 = arith.constant 0 : i32
    %c0_i32_0 = arith.constant 0 : i32
    %c0_i32_1 = arith.constant 0 : i32
    return %c0_i32, %c0_i32_0 : i32, i32
  }
  func.func @transform_2(%arg0: i32) -> (i32, i32) {
    %c0_i32 = arith.constant 0 : i32
    %c0_i32_0 = arith.constant 0 : i32
    %c0_i32_1 = arith.constant 0 : i32
    return %c0_i32, %c0_i32_0 : i32, i32
  }
  func.func @transform_3(%arg0: i32) -> (i32, i32) {
    %c0_i32 = arith.constant 0 : i32
    %c0_i32_0 = arith.constant 0 : i32
    %c0_i32_1 = arith.constant 0 : i32
    return %c0_i32, %c0_i32_0 : i32, i32
  }
  func.func @transform_4(%arg0: i32) -> (i32, i32) {
    %c0_i32 = arith.constant 0 : i32
    %c0_i32_0 = arith.constant 0 : i32
    %c0_i32_1 = arith.constant 0 : i32
    return %c0_i32, %c0_i32_0 : i32, i32
  }
  func.func @transform_5(%arg0: i32) -> (i32, i32, i32, i32) {
    %c0_i32 = arith.constant 0 : i32
    %c0_i32_0 = arith.constant 0 : i32
    %c0_i32_1 = arith.constant 0 : i32
    %c0_i32_2 = arith.constant 0 : i32
    %c0_i32_3 = arith.constant 0 : i32
    return %c0_i32, %c0_i32_0, %c0_i32_1, %c0_i32_2 : i32, i32, i32, i32
  }
  func.func @transform_6(%arg0: i32) -> (i32, i32) {
    %c0_i32 = arith.constant 0 : i32
    %c0_i32_0 = arith.constant 0 : i32
    %c0_i32_1 = arith.constant 0 : i32
    return %c0_i32, %c0_i32_0 : i32, i32
  }
  func.func @transform_7(%arg0: i32) -> (i32, i32, i32) {
    %c0_i32 = arith.constant 0 : i32
    %c0_i32_0 = arith.constant 0 : i32
    %c0_i32_1 = arith.constant 0 : i32
    return %arg0, %c0_i32, %c0_i32_0 : i32, i32, i32
  }
  func.func @transform_8(%arg0: i32) -> (i32, i32) {
    %c0_i32 = arith.constant 0 : i32
    %c0_i32_0 = arith.constant 0 : i32
    %c0_i32_1 = arith.constant 0 : i32
    return %c0_i32, %c0_i32_0 : i32, i32
  }
  func.func @transform_9(%arg0: i32) -> (i32, i32) {
    %c0_i32 = arith.constant 0 : i32
    %c0_i32_0 = arith.constant 0 : i32
    %c0_i32_1 = arith.constant 0 : i32
    return %c0_i32, %c0_i32_0 : i32, i32
  }
  func.func @transform_10(%arg0: i32) -> (i32, i32, i32) {
    %c0_i32 = arith.constant 0 : i32
    %c0_i32_0 = arith.constant 0 : i32
    %c0_i32_1 = arith.constant 0 : i32
    return %arg0, %c0_i32, %c0_i32_0 : i32, i32, i32
  }
}

</mosaic_0001>

<bundles_post_ra>
// kernel: tpu_custom_call.1
= control target key start
LH: loop header
LB: loop body
LE: loop exit
PB: predicated region body
PF: predicated region fallthrough
CT: control target
= control target key end

     0   :  { %15 = vsyncpa [#allocation4], 0  ;;  %s6887_s0 = inlined_call_operand.hbm [shape: f32[2,8,256], index: 0, kind: input, shape index: {}]   ;;  %s6888_s1 = inlined_call_operand.vmem [shape: f32[1,8], index: 1, kind: input, shape index: {}]   ;;  %s6889_s2 = inlined_call_operand.vmem [shape: f32[1,8], index: 2, kind: input, shape index: {}]   ;;  %s6890_s3 = inlined_call_operand.vmem [shape: f32[8,8], index: 3, kind: input, shape index: {}]   ;;  %s6891_s4 = inlined_call_operand.vmem [shape: f32[8,8], index: 4, kind: input, shape index: {}]   ;;  %s6892_s5 = inlined_call_operand.vmem [shape: bf16[3,3,8,16], index: 5, kind: input, shape index: {}]   ;;  %s6893_s6 = inlined_call_operand.vmem [shape: f32[1,16], index: 6, kind: input, shape index: {}]   ;;  %s6894_s7 = inlined_call_operand.vmem [shape: f32[2,1,32], index: 7, kind: input, shape index: {}]   ;;  %s6895_s8 = inlined_call_operand.vmem [shape: f32[32,16], index: 8, kind: input, shape index: {}]   ;;  %s6896_s9 = inlined_call_operand.vmem [shape: f32[1,16], index: 9, kind: input, shape index: {}]   ;;  %s6897_s10 = inlined_call_operand.hbm [shape: f32[2,16,256], index: 10, kind: output, shape index: {}]  }
   0x1   :  { %17 = vsyncpa [#allocation4 + $0x1], 0 }
   0x2   :  { %18 = vsyncpa [#allocation5], 0 }
   0x3   :  { %20 = vsyncpa [#allocation5 + $0x1], 0  ;;  %s5559_s13 = smov 0   ;;  %s5561_s14 = smov 0  }
   0x4   :  { %s5563_s15 = smov 0   ;;  %s5565_s16 = smov 0  }
   0x5 LB: > { %s5580_s17 = sadd.s32 4294967295, %s5495_s16   ;;  %s4229_s18 = sadd.s32 4294967294, %s5495_s16   ;;  %s5495_s16 = sphi %s5565_s16, %s6937_s16   ;;  %s5491_s15 = sphi %s5563_s15, %s6936_s15   ;;  %s5487_s14 = sphi %s5561_s14, %s6935_s14   ;;  %s5483_s13 = sphi %s5559_s13, %s6934_s13  }
   0x6   : > { %s5584_s19 = sadd.s32 1, %s5495_s16   ;;  %s33_s20 = sadd.s32 1, %s5491_s15 }
   0x7   : > { %s30_s21 = ssub.s32 %s5495_s16, %s5584_s19  ;;  %p40_p0 = scmp.ne.s32.totalorder %s5491_s15, %s5487_s14 }
   0x8   : > { %p31_p1 = scmp.eq.s32.totalorder %s30_s21, 0  ;;  %p41_p2 = scmp.eq.s32.totalorder %s5495_s16, 0 }
   0x9   : > { %p46_p3 = scmp.ne.s32.totalorder %s5487_s14, %s5483_s13  ;;  %p47_p4 = scmp.eq.s32.totalorder %s5580_s17, 0 }
   0xa   : > { %s5596_s22 = scalar_select %p31_p1, %s5491_s15, %s33_s20  }
   0xb   : > { %p5598_p5 = por %p41_p2, %p40_p0  ;;  %p5602_p6 = por %p47_p4, %p46_p3 }
   0xc   : > { %6907 = sst [smem:[#allocation9_spill]] %s5596_s22  ;;  %p264_p7 = scmp.eq.s32.totalorder %s5580_s17, 1 }
   0xd   : > { %p270_p8 = scmp.eq.s32.totalorder %s4229_s18, 1  ;;  %p5225_p10 = scmp.lt.s32.totalorder %s5495_s16, 2 }
   0xe   : > { %p5609_p11 = por %p264_p7, %p40_p0  ;;  %s314_s27 = sand.u32 1, %s5491_s15  }
   0xf   : > { %p5613_p12 = por %p270_p8, %p46_p3  ;;  %s4434_s28 = sshll.u32 %s5495_s16, 8 }
  0x10   : > { %s6910_s25 = scalar_select %p5609_p11, 1, 0 }
  0x11   : > { %s6911_s26 = scalar_select %p5613_p12, 1, 0 }
  0x12   : > { %s4232_s29 = sshll.u32 %s314_s27, 4  ;;  %s5622_s12 = scalar_lea.hbm %s6887_s0, %s4434_s28 }
  0x13   : > { %s318_s18 = scalar_lea.vmem [#allocation3], %s4232_s29  ;;  %p5626_p13 = pnand %p5225_p10, %p5598_p5 }
  0x14   : > { %s326_s20 = sshll.u32 %s318_s18, 4  ;;  %s315_s30 = scalar_lea.sflag [#allocation4], %s314_s27  ;;  %s5630_s20 = int_to_ptr.vmem [resolvable:$true] %s326_s20 }
  0x15   : > { %s5399_s28 = scalar_lea.hbm %s5622_s12, 256  ;;  %p5401_p3 = pneg %p5626_p13 }
  0x16   : > { %p5400_p2 = scmp.ne.s32.totalorder %s5622_s12, %s5399_s28  ;;  %s5404_s11 = scalar_lea.hbm %s6887_s0, 512 }
  0x17   : > { %p5405_p5 = scmp.lt.u32.totalorder %s5622_s12, %s6887_s0  ;;  %p5406_p8 = scmp.lt.u32.totalorder %s5404_s11, %s5399_s28 }
  0x18   : > { %p5402_p4 = pnand %p5401_p3, %p5400_p2  ;;  %p5408_p9 = scmp.lt.u32.totalorder %s5399_s28, %s5622_s12 }
  0x19   : > { %p5407_p10 = por %p5406_p8, %p5405_p5 }
  0x1a   : > { %p5403_p7 = pneg %p5402_p4 }
  0x1b   : > { %p5409_p0 = por %p5408_p9, %p5407_p10 }
  0x1d   : > { %p5410_p1 = pnand %p5409_p0, %p5403_p7 }
  0x1f   : > { %5413 = shalt.err (!%p5410_p1)
}
  0x20   : > { %s5414_s27 = scalar_lea.vmem %s5630_s20, 256  ;;  %s5497_s23 = smov [#allocation3]  }
  0x21   : > { %p5415_p2 = scmp.ne.s32.totalorder %s5630_s20, %s5414_s27  ;;  %s5419_s29 = sshll.u32 %s5497_s23, 4  ;;  %s5420_s29 = int_to_ptr.vmem [resolvable:$false] %s5419_s29 }
  0x22   : > { %s5421_s22 = scalar_lea.vmem %s5420_s29, 512  ;;  %p5422_p11 = scmp.lt.s32.totalorder %s5630_s20, %s5420_s29 }
  0x23   : > { %p5417_p4 = pnand %p5415_p2, %p5401_p3  ;;  %p5423_p5 = scmp.lt.s32.totalorder %s5421_s22, %s5414_s27 }
  0x25   : > { %p5418_p12 = pneg %p5417_p4  ;;  %p5424_p8 = por %p5423_p5, %p5422_p11 }
  0x27   : > { %p5425_p9 = pnand %p5424_p8, %p5418_p12 }
  0x29   : > { %5428 = shalt.err (!%p5425_p9)
}
  0x2a   : > { %5220 = dma.hbm_to_vmem [thread:$0]  (!%p5626_p13), %s5622_s12, 256, %s5630_s20, %s315_s30  }
  0x2b   : > { %p6913_p0 = scmp.lt.s32.totalorder %s5495_s16, 3  ;;  %p6914_p1 = scmp.ge.s32.totalorder %s5495_s16, 1 }
  0x2d   : > { %p338_p3 = pnand %p6914_p1, %p6913_p0 }
  0x2f   : > { %341 = sbr.rel (%p338_p3) target bundleno = 1563 (0x61b), region = 60 }
  0x36   : > { %s5664_s28 = sand.u32 1, %s5487_s14  }
  0x37   : > { %s4236_s11 = sshll.u32 %s5664_s28, 4  ;;  %s344_s18 = scalar_lea.sflag [#allocation4], %s5664_s28 }
  0x38   : > { %s5668_s27 = scalar_lea.vmem [#allocation3], %s4236_s11 }
  0x39   : > { %5474 = dma.done.wait (%p5602_p6), %s344_s18, 256  }
  0x3a   : > { %5476 = vsyncadd (%p5602_p6), %s344_s18, 4294967040  ;;  %vm457_vm0 = vcmask 64512   ;;  %v6899_v0 = vmov 0.0   ;;  %v391_v1 = vld [vmem:[%s5668_s27] sm:$0xff]  ;;  %vm1234_vm1 = vcmask 58368   ;;  %v392_v2 = vld [vmem:[%s5668_s27 + $0x8] sm:$0xff] }
  0x3b   : > { %1236 = vst.msk [vmem:[#allocation2 + $0x18] sm:$0xff] %vm457_vm0, %v6899_v0  ;;  %1237 = vst.msk [vmem:[#allocation2 + $0x20] sm:$0xff] %vm457_vm0, %v6899_v0  ;;  %4602 = vmatprep.subr.mxu1 %v6899_v0  ;;  %4612 = vmatprep.subr.mxu0 %v6899_v0  ;;  %v5795_v6 = vld [vmem:[%s6890_s3] sm:$0xff]  ;;  %vm5499_vm2 = vmmov 0   ;;  %vm1467_vm3 = vcmask 1043456   ;;  %p387_p6 = scmp.lt.s32.totalorder %s5580_s17, 1 }
  0x3c   : > { %1232 = vst.msk [vmem:[#allocation2] sm:$0xff] %vm457_vm0, %v6899_v0  ;;  %1233 = vst.msk [vmem:[#allocation2 + $0x8] sm:$0xff] %vm457_vm0, %v6899_v0  ;;  %393 = vxpose.xlu0.b32.start.end [1/1] (short) %v391_v1, 128  ;;  %4603 = vmatpush3.msra.mxu1 %v5795_v6  ;;  %vm3916_vm4 = vcmask 261120   ;;  %s4237_s24 = sshll.u32 %s5664_s28, 5  ;;  %s4435_s21 = sshll.u32 %s5580_s17, 9 }
  0x3d   : > { %1239 = vst.msk [vmem:[#allocation2 + $0x30] sm:$0xff] %vm457_vm0, %v6899_v0  ;;  %1240 = vst.msk [vmem:[#allocation2 + $0x38] sm:$0xff] %vm457_vm0, %v6899_v0  ;;  %4604 = vmatprep.mubr.msk.f32.mxu1 %vm5499_vm2, %v6899_v0  ;;  %4607 = vmatprep.subr.mxu1 %v6899_v0  ;;  %s388_s29 = scalar_select %p387_p6, %s5580_s17, 1 }
  0x3e   : > { %1242 = vst.msk [vmem:[#allocation2 + $0x48] sm:$0xff] %vm457_vm0, %v6899_v0  ;;  %1243 = vst.msk [vmem:[#allocation2 + $0x50] sm:$0xff] %vm457_vm0, %v6899_v0  ;;  %4614 = vmatprep.mubr.msk.f32.mxu0 %vm5499_vm2, %v6899_v0  ;;  %s386_s12 = scalar_lea.vmem [#allocation6], %s4237_s24  ;;  %s4134_s22 = scalar_lea.sflag [#allocation5], %s5664_s28 }
  0x3f   : > { %1245 = vst.msk [vmem:[#allocation2 + $0x60] sm:$0xff] %vm457_vm0, %v6899_v0  ;;  %1246 = vst.msk [vmem:[#allocation2 + $0x68] sm:$0xff] %vm457_vm0, %v6899_v0  ;;  %s389_s18 = scalar_lea.vmem %s6894_s7, %s388_s29  ;;  %s4147_s20 = sshll.u32 %s386_s12, 4  ;;  %s6838_s20 = int_to_ptr.vmem [resolvable:$true] %s4147_s20 }
  0x40   : > { %1248 = vst.msk [vmem:[#allocation2 + $0x78] sm:$0xff] %vm457_vm0, %v6899_v0  ;;  %1249 = vst.msk [vmem:[#allocation2 + $0x80] sm:$0xff] %vm457_vm0, %v6899_v0  ;;  %s6843_s29 = scalar_lea.hbm %s6897_s10, %s4435_s21  ;;  %s5429_s11 = scalar_lea.vmem %s6838_s20, 512 }
  0x41   : > { %1251 = vst.msk [vmem:[#allocation2 + $0x90] sm:$0xff] %vm457_vm0, %v6899_v0  ;;  %1252 = vst.msk [vmem:[#allocation2 + $0x98] sm:$0xff] %vm457_vm0, %v6899_v0  ;;  %p5430_p11 = scmp.ne.s32.totalorder %s6838_s20, %s5429_s11  ;;  %p6930_p12 = scmp.ne.s32.totalorder %s6910_s25, 0 }
  0x42   : > { %1254 = vst.msk [vmem:[#allocation2 + $0xa8] sm:$0xff] %vm457_vm0, %v6899_v0  ;;  %1255 = vst.msk [vmem:[#allocation2 + $0xb0] sm:$0xff] %vm457_vm0, %v6899_v0  ;;  %s5501_s17 = smov [#allocation6]  }
  0x43   : > { %1257 = vst.msk [vmem:[#allocation2 + $0xc0] sm:$0xff] %vm457_vm0, %v6899_v0  ;;  %1258 = vst.msk [vmem:[#allocation2 + $0xc8] sm:$0xff] %vm457_vm0, %v6899_v0  ;;  %p5431_p13 = pnand %p5430_p11, %p6930_p12 }
  0x44   : > { %1260 = vst.msk [vmem:[#allocation2 + $0xd8] sm:$0xff] %vm457_vm0, %v6899_v0  ;;  %1261 = vst.msk [vmem:[#allocation2 + $0xe0] sm:$0xff] %vm457_vm0, %v6899_v0 }
  0x45   : > { %1263 = vst.msk [vmem:[#allocation2 + $0xf0] sm:$0xff] %vm457_vm0, %v6899_v0  ;;  %1264 = vst.msk [vmem:[#allocation2 + $0xf8] sm:$0xff] %vm457_vm0, %v6899_v0  ;;  %p5432_p7 = pneg %p5431_p13 }
  0x46   : > { %1266 = vst.msk [vmem:[#allocation2 + $0x108] sm:$0xff] %vm457_vm0, %v6899_v0  ;;  %1267 = vst.msk [vmem:[#allocation2 + $0x110] sm:$0xff] %vm457_vm0, %v6899_v0 }
  0x47   : > { %1269 = vst.msk [vmem:[#allocation2 + $0x120] sm:$0xff] %vm457_vm0, %v6899_v0  ;;  %1270 = vst.msk [vmem:[#allocation2 + $0x128] sm:$0xff] %vm457_vm0, %v6899_v0 }
  0x48   : > { %1272 = vst.msk [vmem:[#allocation2 + $0x138] sm:$0xff] %vm457_vm0, %v6899_v0  ;;  %1273 = vst.msk [vmem:[#allocation2 + $0x140] sm:$0xff] %vm457_vm0, %v6899_v0 }
  0x49   : > { %1275 = vst.msk [vmem:[#allocation2 + $0x150] sm:$0xff] %vm457_vm0, %v6899_v0  ;;  %1276 = vst.msk [vmem:[#allocation2 + $0x158] sm:$0xff] %vm457_vm0, %v6899_v0 }
  0x4a   : > { %1278 = vst.msk [vmem:[#allocation2 + $0x168] sm:$0xff] %vm457_vm0, %v6899_v0  ;;  %1279 = vst.msk [vmem:[#allocation2 + $0x170] sm:$0xff] %vm457_vm0, %v6899_v0 }
  0x4b   : > { %1281 = vst.msk [vmem:[#allocation2 + $0x180] sm:$0xff] %vm457_vm0, %v6899_v0  ;;  %1282 = vst.msk [vmem:[#allocation2 + $0x188] sm:$0xff] %vm457_vm0, %v6899_v0 }
  0x4c   : > { %1284 = vst.msk [vmem:[#allocation2 + $0x198] sm:$0xff] %vm457_vm0, %v6899_v0  ;;  %1285 = vst.msk [vmem:[#allocation2 + $0x1a0] sm:$0xff] %vm457_vm0, %v6899_v0 }
  0x4d   : > { %1238 = vst.msk [vmem:[#allocation2 + $0x28] sm:$0x3] %vm1234_vm1, %v6899_v0  ;;  %1235 = vst.msk [vmem:[#allocation2 + $0x10] sm:$0x3] %vm1234_vm1, %v6899_v0 }
  0x4e   : > { %1241 = vst.msk [vmem:[#allocation2 + $0x40] sm:$0x3] %vm1234_vm1, %v6899_v0  ;;  %1244 = vst.msk [vmem:[#allocation2 + $0x58] sm:$0x3] %vm1234_vm1, %v6899_v0 }
  0x4f   : > { %1247 = vst.msk [vmem:[#allocation2 + $0x70] sm:$0x3] %vm1234_vm1, %v6899_v0  ;;  %1250 = vst.msk [vmem:[#allocation2 + $0x88] sm:$0x3] %vm1234_vm1, %v6899_v0 }
  0x50   : > { %1253 = vst.msk [vmem:[#allocation2 + $0xa0] sm:$0x3] %vm1234_vm1, %v6899_v0  ;;  %1256 = vst.msk [vmem:[#allocation2 + $0xb8] sm:$0x3] %vm1234_vm1, %v6899_v0 }
  0x51   : > { %1259 = vst.msk [vmem:[#allocation2 + $0xd0] sm:$0x3] %vm1234_vm1, %v6899_v0  ;;  %1262 = vst.msk [vmem:[#allocation2 + $0xe8] sm:$0x3] %vm1234_vm1, %v6899_v0 }
  0x52   : > { %1265 = vst.msk [vmem:[#allocation2 + $0x100] sm:$0x3] %vm1234_vm1, %v6899_v0  ;;  %1268 = vst.msk [vmem:[#allocation2 + $0x118] sm:$0x3] %vm1234_vm1, %v6899_v0 }
  0x53   : > { %1271 = vst.msk [vmem:[#allocation2 + $0x130] sm:$0x3] %vm1234_vm1, %v6899_v0  ;;  %1274 = vst.msk [vmem:[#allocation2 + $0x148] sm:$0x3] %vm1234_vm1, %v6899_v0 }
  0x54   : > { %1277 = vst.msk [vmem:[#allocation2 + $0x160] sm:$0x3] %vm1234_vm1, %v6899_v0  ;;  %1280 = vst.msk [vmem:[#allocation2 + $0x178] sm:$0x3] %vm1234_vm1, %v6899_v0 }
  0x55   : > { %1283 = vst.msk [vmem:[#allocation2 + $0x190] sm:$0x3] %vm1234_vm1, %v6899_v0  ;;  %1286 = vst.msk [vmem:[#allocation2 + $0x1a8] sm:$0x3] %vm1234_vm1, %v6899_v0 }
  0x79   : > { %425 = vxpose.xlu0.b32.start.end [1/1] (short) %v392_v2, 128 }
  0xbc   : > { %v5786_v3 = vpop.trf.xlu0 }
  0xbd   : > { %v527_v21 = vmul.f32 %v5786_v3, %v5786_v3  ;;  %v458_v25 = vsel %vm457_vm0, %v5786_v3, 0.0 }
  0xbf   : > { %v559_v30 = vsel %vm457_vm0, %v527_v21, 0.0 }
  0xc0   : > { %v5788_v4 = vpop.trf.xlu0 }
  0xc1   : > { %v528_v20 = vmul.f32 %v5788_v4, %v5788_v4  ;;  %v459_v22 = vsel %vm457_vm0, %v5788_v4, 0.0 }
  0xc2   : > { %v460_v29 = vadd.f32 %v459_v22, %v458_v25 }
  0xc3   : > { %v560_v26 = vsel %vm457_vm0, %v528_v20, 0.0 }
  0xc4   : > { %v5790_v5 = vpop.trf.xlu0  ;;  %v561_v34 = vadd.f32 %v560_v26, %v559_v30 }
  0xc5   : > { %v529_v23 = vmul.f32 %v5790_v5, %v5790_v5  ;;  %v461_v27 = vsel %vm457_vm0, %v5790_v5, 0.0 }
  0xc6   : > { %v462_v35 = vadd.f32 %v461_v27, %v460_v29 }
  0xc7   : > { %v562_v31 = vsel %vm457_vm0, %v529_v23, 0.0 }
  0xc8   : > { %v5800_v7 = vpop.trf.xlu0  ;;  %v563_v40 = vadd.f32 %v562_v31, %v561_v34 }
  0xc9   : > { %v530_v28 = vmul.f32 %v5800_v7, %v5800_v7  ;;  %v463_v32 = vsel %vm457_vm0, %v5800_v7, 0.0 }
  0xca   : > { %v464_v41 = vadd.f32 %v463_v32, %v462_v35 }
  0xcb   : > { %v564_v37 = vsel %vm457_vm0, %v530_v28, 0.0 }
  0xcc   : > { %v5805_v8 = vpop.trf.xlu0  ;;  %v565_v45 = vadd.f32 %v564_v37, %v563_v40 }
  0xcd   : > { %v531_v33 = vmul.f32 %v5805_v8, %v5805_v8  ;;  %v465_v38 = vsel %vm457_vm0, %v5805_v8, 0.0 }
  0xce   : > { %v466_v46 = vadd.f32 %v465_v38, %v464_v41 }
  0xcf   : > { %v566_v42 = vsel %vm457_vm0, %v531_v33, 0.0 }
  0xd0   : > { %v5807_v9 = vpop.trf.xlu0  ;;  %v567_v51 = vadd.f32 %v566_v42, %v565_v45 }
  0xd1   : > { %v532_v39 = vmul.f32 %v5807_v9, %v5807_v9  ;;  %v467_v43 = vsel %vm457_vm0, %v5807_v9, 0.0 }
  0xd2   : > { %v468_v52 = vadd.f32 %v467_v43, %v466_v46 }
  0xd3   : > { %v568_v48 = vsel %vm457_vm0, %v532_v39, 0.0 }
  0xd4   : > { %v5809_v10 = vpop.trf.xlu0  ;;  %v569_v56 = vadd.f32 %v568_v48, %v567_v51 }
  0xd5   : > { %v533_v44 = vmul.f32 %v5809_v10, %v5809_v10  ;;  %v469_v49 = vsel %vm457_vm0, %v5809_v10, 0.0 }
  0xd6   : > { %v470_v57 = vadd.f32 %v469_v49, %v468_v52 }
  0xd7   : > { %v570_v53 = vsel %vm457_vm0, %v533_v44, 0.0 }
  0xd8   : > { %v5811_v11 = vpop.trf.xlu0  ;;  %v571_v62 = vadd.f32 %v570_v53, %v569_v56 }
  0xd9   : > { %v534_v50 = vmul.f32 %v5811_v11, %v5811_v11  ;;  %v471_v54 = vsel %vm457_vm0, %v5811_v11, 0.0 }
  0xda   : > { %v472_v63 = vadd.f32 %v471_v54, %v470_v57 }
  0xdb   : > { %v572_v59 = vsel %vm457_vm0, %v534_v50, 0.0 }
  0xdc   : > { %v5813_v12 = vpop.trf.xlu0  ;;  %v573_v21 = vadd.f32 %v572_v59, %v571_v62 }
  0xdd   : > { %v535_v55 = vmul.f32 %v5813_v12, %v5813_v12  ;;  %v473_v60 = vsel %vm457_vm0, %v5813_v12, 0.0 }
  0xde   : > { %v474_v22 = vadd.f32 %v473_v60, %v472_v63 }
  0xdf   : > { %v574_v1 = vsel %vm457_vm0, %v535_v55, 0.0 }
  0xe0   : > { %v5815_v13 = vpop.trf.xlu0  ;;  %v575_v28 = vadd.f32 %v574_v1, %v573_v21 }
  0xe1   : > { %v536_v61 = vmul.f32 %v5815_v13, %v5815_v13  ;;  %v475_v2 = vsel %vm457_vm0, %v5815_v13, 0.0 }
  0xe2   : > { %v476_v29 = vadd.f32 %v475_v2, %v474_v22 }
  0xe3   : > { %v576_v25 = vsel %vm457_vm0, %v536_v61, 0.0 }
  0xe4   : > { %v5817_v14 = vpop.trf.xlu0  ;;  %v577_v33 = vadd.f32 %v576_v25, %v575_v28 }
  0xe5   : > { %v537_v20 = vmul.f32 %v5817_v14, %v5817_v14  ;;  %v477_v26 = vsel %vm457_vm0, %v5817_v14, 0.0 }
  0xe6   : > { %v478_v34 = vadd.f32 %v477_v26, %v476_v29 }
  0xe7   : > { %v578_v30 = vsel %vm457_vm0, %v537_v20, 0.0 }
  0xe8   : > { %v5819_v15 = vpop.trf.xlu0  ;;  %v579_v40 = vadd.f32 %v578_v30, %v577_v33 }
  0xe9   : > { %v538_v27 = vmul.f32 %v5819_v15, %v5819_v15  ;;  %v479_v31 = vsel %vm457_vm0, %v5819_v15, 0.0 }
  0xea   : > { %v480_v41 = vadd.f32 %v479_v31, %v478_v34 }
  0xeb   : > { %v580_v37 = vsel %vm457_vm0, %v538_v27, 0.0 }
  0xec   : > { %v5821_v16 = vpop.trf.xlu0  ;;  %v581_v45 = vadd.f32 %v580_v37, %v579_v40 }
  0xed   : > { %v539_v32 = vmul.f32 %v5821_v16, %v5821_v16  ;;  %v481_v38 = vsel %vm457_vm0, %v5821_v16, 0.0 }
  0xee   : > { %v482_v46 = vadd.f32 %v481_v38, %v480_v41 }
  0xef   : > { %v582_v42 = vsel %vm457_vm0, %v539_v32, 0.0 }
  0xf0   : > { %v5823_v17 = vpop.trf.xlu0  ;;  %v583_v52 = vadd.f32 %v582_v42, %v581_v45 }
  0xf1   : > { %v540_v39 = vmul.f32 %v5823_v17, %v5823_v17  ;;  %v483_v43 = vsel %vm457_vm0, %v5823_v17, 0.0 }
  0xf2   : > { %v484_v53 = vadd.f32 %v483_v43, %v482_v46 }
  0xf3   : > { %v584_v49 = vsel %vm457_vm0, %v540_v39, 0.0 }
  0xf4   : > { %v5825_v18 = vpop.trf.xlu0  ;;  %v585_v57 = vadd.f32 %v584_v49, %v583_v52 }
  0xf5   : > { %v541_v44 = vmul.f32 %v5825_v18, %v5825_v18  ;;  %v485_v50 = vsel %vm457_vm0, %v5825_v18, 0.0 }
  0xf6   : > { %v486_v59 = vadd.f32 %v485_v50, %v484_v53 }
  0xf7   : > { %v586_v54 = vsel %vm457_vm0, %v541_v44, 0.0 }
  0xf8   : > { %v5827_v19 = vpop.trf.xlu0  ;;  %v587_v1 = vadd.f32 %v586_v54, %v585_v57 }
  0xf9   : > { %v542_v51 = vmul.f32 %v5827_v19, %v5827_v19  ;;  %v487_v55 = vsel %vm457_vm0, %v5827_v19, 0.0 }
  0xfa   : > { %v488_v2 = vadd.f32 %v487_v55, %v486_v59 }
  0xfb   : > { %v588_v61 = vsel %vm457_vm0, %v542_v51, 0.0 }
  0xfc   : > { %v5837_v24 = vpop.trf.xlu0  ;;  %v589_v25 = vadd.f32 %v588_v61, %v587_v1 }
  0xfd   : > { %v543_v56 = vmul.f32 %v5837_v24, %v5837_v24  ;;  %v489_v62 = vsel %vm457_vm0, %v5837_v24, 0.0 }
  0xfe   : > { %v490_v26 = vadd.f32 %v489_v62, %v488_v2 }
  0xff   : > { %v590_v20 = vsel %vm457_vm0, %v543_v56, 0.0 }
 0x100   : > { %v5852_v36 = vpop.trf.xlu0  ;;  %v591_v31 = vadd.f32 %v590_v20, %v589_v25 }
 0x101   : > { %v544_v63 = vmul.f32 %v5852_v36, %v5852_v36  ;;  %v491_v21 = vsel %vm457_vm0, %v5852_v36, 0.0 }
 0x102   : > { %v492_v32 = vadd.f32 %v491_v21, %v490_v26 }
 0x103   : > { %v592_v28 = vsel %vm457_vm0, %v544_v63, 0.0 }
 0x104   : > { %v5864_v47 = vpop.trf.xlu0  ;;  %v593_v38 = vadd.f32 %v592_v28, %v591_v31 }
 0x105   : > { %v545_v22 = vmul.f32 %v5864_v47, %v5864_v47  ;;  %v493_v29 = vsel %vm457_vm0, %v5864_v47, 0.0 }
 0x106   : > { %v494_v39 = vadd.f32 %v493_v29, %v492_v32 }
 0x107   : > { %v594_v33 = vsel %vm457_vm0, %v545_v22, 0.0 }
 0x108   : > { %v5876_v58 = vpop.trf.xlu0  ;;  %v595_v44 = vadd.f32 %v594_v33, %v593_v38 }
 0x109   : > { %v546_v30 = vmul.f32 %v5876_v58, %v5876_v58  ;;  %v495_v34 = vsel %vm457_vm0, %v5876_v58, 0.0 }
 0x10a   : > { %v496_v45 = vadd.f32 %v495_v34, %v494_v39 }
 0x10b   : > { %v596_v41 = vsel %vm457_vm0, %v546_v30, 0.0 }
 0x10c   : > { %v5888_v23 = vpop.trf.xlu0  ;;  %v597_v51 = vadd.f32 %v596_v41, %v595_v44 }
 0x10d   : > { %v547_v37 = vmul.f32 %v5888_v23, %v5888_v23  ;;  %v497_v42 = vsel %vm457_vm0, %v5888_v23, 0.0 }
 0x10e   : > { %v498_v52 = vadd.f32 %v497_v42, %v496_v45 }
 0x10f   : > { %v598_v46 = vsel %vm457_vm0, %v547_v37, 0.0 }
 0x110   : > { %v5900_v35 = vpop.trf.xlu0  ;;  %v599_v57 = vadd.f32 %v598_v46, %v597_v51 }
 0x111   : > { %v548_v43 = vmul.f32 %v5900_v35, %v5900_v35  ;;  %v499_v49 = vsel %vm457_vm0, %v5900_v35, 0.0 }
 0x112   : > { %v500_v59 = vadd.f32 %v499_v49, %v498_v52 }
 0x113   : > { %v600_v54 = vsel %vm457_vm0, %v548_v43, 0.0 }
 0x114   : > { %v5912_v48 = vpop.trf.xlu0  ;;  %v601_v1 = vadd.f32 %v600_v54, %v599_v57 }
 0x115   : > { %v549_v50 = vmul.f32 %v5912_v48, %v5912_v48  ;;  %v501_v55 = vsel %vm457_vm0, %v5912_v48, 0.0 }
 0x116   : > { %v502_v2 = vadd.f32 %v501_v55, %v500_v59 }
 0x117   : > { %v602_v61 = vsel %vm457_vm0, %v549_v50, 0.0 }
 0x118   : > { %v5924_v60 = vpop.trf.xlu0  ;;  %v603_v26 = vadd.f32 %v602_v61, %v601_v1 }
 0x119   : > { %v550_v56 = vmul.f32 %v5924_v60, %v5924_v60  ;;  %v503_v62 = vsel %vm457_vm0, %v5924_v60, 0.0 }
 0x11a   : > { %v504_v28 = vadd.f32 %v503_v62, %v502_v2 }
 0x11b   : > { %v604_v21 = vsel %vm457_vm0, %v550_v56, 0.0 }
 0x11c   : > { %v5936_v27 = vpop.trf.xlu0  ;;  %v605_v32 = vadd.f32 %v604_v21, %v603_v26 }
 0x11d   : > { %v551_v63 = vmul.f32 %v5936_v27, %v5936_v27  ;;  %v505_v22 = vsel %vm457_vm0, %v5936_v27, 0.0 }
 0x11e   : > { %v506_v33 = vadd.f32 %v505_v22, %v504_v28 }
 0x11f   : > { %v606_v29 = vsel %vm457_vm0, %v551_v63, 0.0 }
 0x120   : > { %v5948_v40 = vpop.trf.xlu0  ;;  %v607_v41 = vadd.f32 %v606_v29, %v605_v32 }
 0x121   : > { %v552_v25 = vmul.f32 %v5948_v40, %v5948_v40  ;;  %v507_v30 = vsel %vm457_vm0, %v5948_v40, 0.0 }
 0x122   : > { %v508_v42 = vadd.f32 %v507_v30, %v506_v33 }
 0x123   : > { %v608_v37 = vsel %vm457_vm0, %v552_v25, 0.0 }
 0x124   : > { %v5960_v53 = vpop.trf.xlu0  ;;  %v609_v46 = vadd.f32 %v608_v37, %v607_v41 }
 0x125   : > { %v553_v31 = vmul.f32 %v5960_v53, %v5960_v53  ;;  %v509_v38 = vsel %vm457_vm0, %v5960_v53, 0.0 }
 0x126   : > { %v510_v49 = vadd.f32 %v509_v38, %v508_v42 }
 0x127   : > { %v610_v43 = vsel %vm457_vm0, %v553_v31, 0.0 }
 0x128   : > { %v5972_v20 = vpop.trf.xlu0  ;;  %v611_v55 = vadd.f32 %v610_v43, %v609_v46 }
 0x129   : > { %v554_v39 = vmul.f32 %v5972_v20, %v5972_v20  ;;  %v511_v44 = vsel %vm457_vm0, %v5972_v20, 0.0 }
 0x12a   : > { %v512_v56 = vadd.f32 %v511_v44, %v510_v49 }
 0x12b   : > { %v612_v51 = vsel %vm457_vm0, %v554_v39, 0.0 }
 0x12c   : > { %v5984_v34 = vpop.trf.xlu0  ;;  %v613_v61 = vadd.f32 %v612_v51, %v611_v55 }
 0x12d   : > { %v555_v45 = vmul.f32 %v5984_v34, %v5984_v34  ;;  %v513_v52 = vsel %vm457_vm0, %v5984_v34, 0.0 }
 0x12e   : > { %v514_v62 = vadd.f32 %v513_v52, %v512_v56 }
 0x12f   : > { %v614_v57 = vsel %vm457_vm0, %v555_v45, 0.0 }
 0x130   : > { %v5996_v50 = vpop.trf.xlu0  ;;  %v615_v22 = vadd.f32 %v614_v57, %v613_v61  ;;  %v782_v57 = vld [vmem:[%s6891_s4] sm:$0xff] }
 0x131   : > { %v556_v54 = vmul.f32 %v5996_v50, %v5996_v50  ;;  %v515_v59 = vsel %vm457_vm0, %v5996_v50, 0.0  ;;  %4613 = vmatpush3.msra.mxu0 %v782_v57 }
 0x132   : > { %v516_v25 = vadd.f32 %v515_v59, %v514_v62 }
 0x133   : > { %v616_v1 = vsel %vm457_vm0, %v556_v54, 0.0 }
 0x134   : > { %v6006_v63 = vpop.trf.xlu0  ;;  %v617_v28 = vadd.f32 %v616_v1, %v615_v22 }
 0x135   : > { %v517_v2 = vsel %vm457_vm0, %v6006_v63, 0.0  ;;  %v557_v21 = vmul.f32 %v6006_v63, %v6006_v63 }
 0x136   : > { %v518_v29 = vadd.f32 %v517_v2, %v516_v25 }
 0x137   : > { %v618_v26 = vsel %vm457_vm0, %v557_v21, 0.0 }
 0x138   : > { %v6014_v30 = vpop.trf.xlu0  ;;  %v619_v33 = vadd.f32 %v618_v26, %v617_v28 }
 0x139   : > { %v519_v31 = vsel %vm457_vm0, %v6014_v30, 0.0  ;;  %v558_v32 = vmul.f32 %v6014_v30, %v6014_v30 }
 0x13a   : > { %v520_v37 = vadd.f32 %v519_v31, %v518_v29  ;;  %v4274_v29 = vld [vmem:[%s6892_s5 + $0x4] sm:$0xf]  ;;  %v4341_v31 = vld [vmem:[%s6892_s5 + $0x10] sm:$0xf] }
 0x13b   : > { %v620_v38 = vsel %vm457_vm0, %v558_v32, 0.0  ;;  %v1369_v32 = vld [vmem:[#allocation2 + $0x1] sm:$0xff]  ;;  %5207 = vmatprep.subr.msk.bf16.mxu0 %vm1467_vm3, %v4341_v31 }
 0x13c   : > { %v521_v39 = vrot.slane %v520_v37, 4  ;;  %v621_v41 = vadd.f32 %v620_v38, %v619_v33  ;;  %v1469_v33 = vsel %vm1467_vm3, %v4274_v29, 0  ;;  %v1370_v38 = vld [vmem:[#allocation2 + $0x9] sm:$0xff] }
 0x13e   : > { %v522_v42 = vadd.f32 %v521_v39, %v520_v37  ;;  %v622_v43 = vrot.slane %v621_v41, 4  ;;  %v6044_v37 = vsel %vm1467_vm3, %v4341_v31, 0  ;;  %v6049_v39 = vld [vmem:[%s6892_s5] sm:$0xf] }
 0x13f   : > { %6915 = vst [vmem:[#allocation10_spill] sm:$0xff] %v6044_v37 }
 0x140   : > { %v523_v44 = vrot.slane %v522_v42, 2  ;;  %v623_v45 = vadd.f32 %v622_v43, %v621_v41  ;;  %v1401_v41 = vpack.c.bf16 %v1370_v38, %v1369_v32 }
 0x142   : > { %v524_v46 = vadd.f32 %v523_v44, %v522_v42  ;;  %v624_v49 = vrot.slane %v623_v45, 2  ;;  %v6058_v44 = vld [vmem:[%s6892_s5 + $0x14] sm:$0xf] }
 0x144   : > { %v525_v51 = vrot.slane %v524_v46, 1  ;;  %v625_v52 = vadd.f32 %v624_v49, %v623_v45  ;;  %v934_v45 = vlaneseq  ;;  %v929_v49 = vld [vmem:[%s6888_s1] sm:$0x1] }
 0x146   : > { %v626_v54 = vrot.slane %v625_v52, 1  ;;  %v526_v55 = vadd.f32 %v525_v51, %v524_v46  ;;  %v935_v46 = vshrl.u32 %v934_v45, 7 }
 0x148   : > { %4605 = vmatmul.mubr.msk.f32.vlgmr.msra.gmra.mrb[0].mxu1 %vm457_vm0, %v526_v55  ;;  %v627_v56 = vadd.f32 %v626_v54, %v625_v52  ;;  %v6065_v51 = vsub.s32 0, %v935_v46 }
 0x149   : > { %4608 = vmatpush3.msra.mxu1 %v5795_v6  ;;  %4609 = vmatprep.mubr.msk.f32.mxu1 %vm5499_vm2, %v6899_v0 }
 0x14a   : > { %4617 = vmatprep.subr.mxu1 %v6899_v0  ;;  %6916 = vst [vmem:[#allocation11_spill] sm:$0xff] %v6065_v51 }
 0x14c   : > { %4610 = vmatmul.mubr.msk.f32.vlgmr.msra.gmra.mrb[2].mxu1 %vm457_vm0, %v627_v56  ;;  %v931_v56 = vld [vmem:[%s6889_s2] sm:$0x1] }
 0x14d   : > { %4619 = vmatprep.mubr.msk.f32.mxu1 %vm5499_vm2, %v6899_v0  ;;  %4618 = vmatpush3.msra.mxu1 %v782_v57 }
 0x14e   : > { %5203 = vmatprep.subr.msk.bf16.mxu1 %vm1467_vm3, %v4274_v29 }
 0x21b   : > { %v698_v59 = vpop.f32.mrb[0].mxu1 }
 0x21c   : > { %v702_v61 = vmul.f32 0.00390625, %v698_v59  ;;  %v4606_v6 = vpop.f32.mrb[1].mxu1 }
 0x21e   : > { %4615 = vmatmul.mubr.msk.f32.vlgmr.msra.gmra.mrb[0].mxu0 %vm457_vm0, %v702_v61  ;;  %v777_v1 = vmul.f32 %v702_v61, %v702_v61 }
 0x21f   : > { %v772_v62 = vpop.f32.mrb[2].mxu1  ;;  %4759 = vmatpush3.bf16.msra.mxu0 %v6044_v37 }
 0x220   : > { %v776_v2 = vmul.f32 0.00390625, %v772_v62  ;;  %v4611_v21 = vpop.f32.mrb[3].mxu1  ;;  %5209 = vmatprep.subr.msk.bf16.mxu0 %vm1467_vm3, %v6058_v44 }
 0x222   : > { %v778_v22 = vsub.f32 %v776_v2, %v777_v1 }
 0x224   : > { %v779_v25 = vmax.f32 %v778_v22, 0.0 }
 0x226   : > { %v780_v26 = vadd.f32 1e-05, %v779_v25 }
 0x228   : > { %5264 = vrsqrt.f32 %v780_v26 }
 0x232   : > { %v5265_v28 = vpop.eup %5264 }
 0x233   : > { %4620 = vmatmul.mubr.msk.f32.vlgmr.msra.gmra.mrb[4].mxu1 %vm457_vm0, %v5265_v28 }
 0x234   : > { %4623 = vmatpush3.bf16.msra.mxu1 %v1469_v33  ;;  %4624 = vmatprep.mubr.msk.bf16.mxu1 %vm457_vm0, %v1401_v41 }
 0x235   : > { %5204 = vmatprep.subr.msk.bf16.mxu1 %vm1467_vm3, %v6049_v39 }
 0x2f1   : > { %v852_v42 = vpop.f32.mrb[0].mxu0 }
 0x2f2   : > { %v4616_v43 = vpop.f32.mrb[1].mxu0 }
 0x306   : > { %v925_v52 = vpop.f32.mrb[4].mxu1 }
 0x307   : > { %v930_v54 = vmul.f32 %v929_v49, %v925_v52  ;;  %v4621_v55 = vpop.f32.mrb[5].mxu1 }
 0x309   : > { %v932_v57 = vmul.f32 %v930_v54, %v852_v42  ;;  %v937_v59 = vrot.slane %v930_v54, %v6065_v51 }
 0x30b   : > { %v933_v61 = vsub.f32 %v931_v56, %v932_v57  ;;  %v938_v6 = vmul.f32 %v937_v59, %v5786_v3  ;;  %v939_v62 = vmul.f32 %v937_v59, %v5788_v4  ;;  %v940_v1 = vmul.f32 %v937_v59, %v5790_v5 }
 0x30c   : > { %v941_v2 = vmul.f32 %v937_v59, %v5800_v7  ;;  %v942_v21 = vmul.f32 %v937_v59, %v5805_v8  ;;  %v943_v22 = vmul.f32 %v937_v59, %v5807_v9  ;;  %v944_v25 = vmul.f32 %v937_v59, %v5809_v10 }
 0x30d   : > { %v974_v26 = vrot.slane %v933_v61, %v6065_v51  ;;  %v945_v28 = vmul.f32 %v937_v59, %v5811_v11  ;;  %v946_v29 = vmul.f32 %v937_v59, %v5813_v12  ;;  %v947_v3 = vmul.f32 %v937_v59, %v5815_v13 }
 0x30e   : > { %v948_v4 = vmul.f32 %v937_v59, %v5817_v14  ;;  %v949_v5 = vmul.f32 %v937_v59, %v5819_v15  ;;  %v950_v7 = vmul.f32 %v937_v59, %v5821_v16  ;;  %v951_v8 = vmul.f32 %v937_v59, %v5823_v17 }
 0x30f   : > { %v952_v9 = vmul.f32 %v937_v59, %v5825_v18  ;;  %v953_v10 = vmul.f32 %v937_v59, %v5827_v19  ;;  %v954_v31 = vmul.f32 %v937_v59, %v5837_v24  ;;  %v955_v11 = vmul.f32 %v937_v59, %v5852_v36 }
 0x310   : > { %v956_v12 = vmul.f32 %v937_v59, %v5864_v47  ;;  %v957_v13 = vmul.f32 %v937_v59, %v5876_v58  ;;  %v958_v14 = vmul.f32 %v937_v59, %v5888_v23  ;;  %v959_v15 = vmul.f32 %v937_v59, %v5900_v35 }
 0x311   : > { %v960_v16 = vmul.f32 %v937_v59, %v5912_v48  ;;  %v961_v17 = vmul.f32 %v937_v59, %v5924_v60  ;;  %v962_v18 = vmul.f32 %v937_v59, %v5936_v27  ;;  %v963_v19 = vmul.f32 %v937_v59, %v5948_v40 }
 0x312   : > { %v964_v24 = vmul.f32 %v937_v59, %v5960_v53  ;;  %v965_v36 = vmul.f32 %v937_v59, %v5972_v20  ;;  %v966_v47 = vmul.f32 %v937_v59, %v5984_v34  ;;  %v967_v58 = vmul.f32 %v937_v59, %v5996_v50 }
 0x313   : > { %v968_v23 = vmul.f32 %v937_v59, %v6006_v63  ;;  %v969_v35 = vmul.f32 %v937_v59, %v6014_v30  ;;  %v6104_v32 = vadd.f32 %v974_v26, %v938_v6  ;;  %v6106_v48 = vadd.f32 %v974_v26, %v939_v62 }
 0x314   : > { %v6108_v60 = vadd.f32 %v974_v26, %v940_v1  ;;  %v6110_v27 = vadd.f32 %v974_v26, %v941_v2  ;;  %v6112_v40 = vadd.f32 %v974_v26, %v942_v21  ;;  %v6114_v53 = vadd.f32 %v974_v26, %v943_v22 }
 0x315   : > { %v6116_v20 = vadd.f32 %v974_v26, %v944_v25  ;;  %v6118_v34 = vadd.f32 %v974_v26, %v945_v28  ;;  %v6120_v50 = vadd.f32 %v974_v26, %v946_v29  ;;  %v6122_v63 = vadd.f32 %v974_v26, %v947_v3 }
 0x316   : > { %v6124_v30 = vadd.f32 %v974_v26, %v948_v4  ;;  %v6126_v33 = vadd.f32 %v974_v26, %v949_v5  ;;  %v6128_v38 = vadd.f32 %v974_v26, %v950_v7  ;;  %v6130_v41 = vadd.f32 %v974_v26, %v951_v8 }
 0x317   : > { %v6132_v42 = vadd.f32 %v974_v26, %v952_v9  ;;  %v6134_v43 = vadd.f32 %v974_v26, %v953_v10  ;;  %v6136_v45 = vadd.f32 %v974_v26, %v954_v31  ;;  %v6138_v46 = vadd.f32 %v974_v26, %v955_v11 }
 0x318   : > { %v6140_v49 = vadd.f32 %v974_v26, %v956_v12  ;;  %v6142_v52 = vadd.f32 %v974_v26, %v957_v13  ;;  %v6144_v54 = vadd.f32 %v974_v26, %v958_v14  ;;  %v6146_v55 = vadd.f32 %v974_v26, %v959_v15 }
 0x319   : > { %v6148_v56 = vadd.f32 %v974_v26, %v960_v16  ;;  %v6150_v57 = vadd.f32 %v974_v26, %v961_v17  ;;  %v6152_v59 = vadd.f32 %v974_v26, %v962_v18  ;;  %v6154_v61 = vadd.f32 %v974_v26, %v963_v19 }
 0x31a   : > { %v6156_v6 = vadd.f32 %v974_v26, %v964_v24  ;;  %v6158_v62 = vadd.f32 %v974_v26, %v965_v36  ;;  %v6160_v1 = vadd.f32 %v974_v26, %v966_v47  ;;  %v6162_v2 = vadd.f32 %v974_v26, %v967_v58 }
 0x31b   : > { %v6164_v21 = vadd.f32 %v974_v26, %v968_v23  ;;  %v6166_v22 = vadd.f32 %v974_v26, %v969_v35  ;;  %v4242_v25 = vmul.f32 -1.442695, %v6104_v32  ;;  %v4243_v28 = vmul.f32 -1.442695, %v6106_v48 }
 0x31c   : > { %6917 = vst [vmem:[#allocation12_spill] sm:$0xff] %v6158_v62  ;;  %6918 = vst [vmem:[#allocation13_spill] sm:$0xff] %v6160_v1  ;;  %v4244_v29 = vmul.f32 -1.442695, %v6108_v60  ;;  %v4245_v3 = vmul.f32 -1.442695, %v6110_v27 }
 0x31d   : > { %6919 = vst [vmem:[#allocation14_spill] sm:$0xff] %v6162_v2  ;;  %6920 = vst [vmem:[#allocation15_spill] sm:$0xff] %v6164_v21  ;;  %5266 = vpow2.f32 %v4242_v25  ;;  %v4246_v4 = vmul.f32 -1.442695, %v6112_v40  ;;  %v4247_v5 = vmul.f32 -1.442695, %v6114_v53 }
 0x31e   : > { %6921 = vst [vmem:[#allocation16_spill] sm:$0xff] %v6166_v22  ;;  %5268 = vpow2.f32 %v4243_v28  ;;  %v4248_v7 = vmul.f32 -1.442695, %v6116_v20  ;;  %v4249_v26 = vmul.f32 -1.442695, %v6118_v34 }
 0x31f   : > { %5270 = vpow2.f32 %v4244_v29  ;;  %v4250_v8 = vmul.f32 -1.442695, %v6120_v50  ;;  %v4251_v9 = vmul.f32 -1.442695, %v6122_v63  ;;  %v4252_v10 = vmul.f32 -1.442695, %v6124_v30 }
 0x320   : > { %5272 = vpow2.f32 %v4245_v3  ;;  %v4253_v31 = vmul.f32 -1.442695, %v6126_v33  ;;  %v4254_v11 = vmul.f32 -1.442695, %v6128_v38  ;;  %v4255_v12 = vmul.f32 -1.442695, %v6130_v41 }
 0x321   : > { %5274 = vpow2.f32 %v4246_v4  ;;  %v4256_v14 = vmul.f32 -1.442695, %v6132_v42  ;;  %v4257_v16 = vmul.f32 -1.442695, %v6134_v43  ;;  %v4258_v18 = vmul.f32 -1.442695, %v6136_v45 }
 0x322   : > { %5276 = vpow2.f32 %v4247_v5  ;;  %v4259_v24 = vmul.f32 -1.442695, %v6138_v46  ;;  %v4260_v47 = vmul.f32 -1.442695, %v6140_v49  ;;  %v4261_v23 = vmul.f32 -1.442695, %v6142_v52 }
 0x323   : > { %5278 = vpow2.f32 %v4248_v7  ;;  %v4262_v25 = vmul.f32 -1.442695, %v6144_v54  ;;  %v4263_v29 = vmul.f32 -1.442695, %v6146_v55  ;;  %v4264_v4 = vmul.f32 -1.442695, %v6148_v56 }
 0x324   : > { %5280 = vpow2.f32 %v4249_v26  ;;  %v4265_v7 = vmul.f32 -1.442695, %v6150_v57 }
 0x325   : > { %5282 = vpow2.f32 %v4250_v8  ;;  %v4266_v8 = vmul.f32 -1.442695, %v6152_v59 }
 0x326   : > { %5284 = vpow2.f32 %v4251_v9 }
 0x327   : > { %v5267_v13 = vpop.eup %5266  ;;  %5286 = vpow2.f32 %v4252_v10  ;;  %v4267_v10 = vmul.f32 -1.442695, %v6154_v61 }
 0x328   : > { %v5269_v15 = vpop.eup %5268  ;;  %5288 = vpow2.f32 %v4253_v31 }
 0x329   : > { %v5271_v17 = vpop.eup %5270  ;;  %5290 = vpow2.f32 %v4254_v11  ;;  %v4268_v11 = vmul.f32 -1.442695, %v6156_v6 }
 0x32a   : > { %v5273_v19 = vpop.eup %5272  ;;  %5292 = vpow2.f32 %v4255_v12 }
 0x32b   : > { %v5275_v36 = vpop.eup %5274  ;;  %5294 = vpow2.f32 %v4256_v14  ;;  %v4269_v14 = vmul.f32 -1.442695, %v6158_v62 }
 0x32c   : > { %v5277_v58 = vpop.eup %5276  ;;  %5296 = vpow2.f32 %v4257_v16 }
 0x32d   : > { %v5279_v35 = vpop.eup %5278  ;;  %5298 = vpow2.f32 %v4258_v18  ;;  %v4270_v18 = vmul.f32 -1.442695, %v6160_v1  ;;  %v1106_v1 = vadd.f32 1.0, %v5271_v17 }
 0x32e   : > { %v5281_v28 = vpop.eup %5280  ;;  %5300 = vpow2.f32 %v4259_v24 }
 0x32f   : > { %v5283_v3 = vpop.eup %5282  ;;  %5302 = vpow2.f32 %v4260_v47  ;;  %v4271_v47 = vmul.f32 -1.442695, %v6162_v2  ;;  %v1107_v2 = vadd.f32 1.0, %v5273_v19 }
 0x330   : > { %v5285_v5 = vpop.eup %5284  ;;  %5304 = vpow2.f32 %v4261_v23 }
 0x331   : > { %v5287_v26 = vpop.eup %5286  ;;  %5306 = vpow2.f32 %v4262_v25  ;;  %v4272_v25 = vmul.f32 -1.442695, %v6164_v21  ;;  %v1108_v21 = vadd.f32 1.0, %v5275_v36  ;;  %v1113_v36 = vadd.f32 1.0, %v5285_v5 }
 0x332   : > { %v5289_v9 = vpop.eup %5288  ;;  %5308 = vpow2.f32 %v4263_v29 }
 0x333   : > { %v5291_v31 = vpop.eup %5290  ;;  %5310 = vpow2.f32 %v4264_v4  ;;  %v4273_v4 = vmul.f32 -1.442695, %v6166_v22  ;;  %v1109_v22 = vadd.f32 1.0, %v5277_v58  ;;  %v1114_v58 = vadd.f32 1.0, %v5287_v26 }
 0x334   : > { %v5293_v12 = vpop.eup %5292  ;;  %5312 = vpow2.f32 %v4265_v7  ;;  %v1104_v7 = vadd.f32 1.0, %v5267_v13  ;;  %v1110_v13 = vadd.f32 1.0, %v5279_v35  ;;  %v1115_v35 = vadd.f32 1.0, %v5289_v9 }
 0x335   : > { %v5295_v16 = vpop.eup %5294  ;;  %5314 = vpow2.f32 %v4266_v8  ;;  %v1105_v8 = vadd.f32 1.0, %v5269_v15 }
 0x336   : > { %v5297_v24 = vpop.eup %5296  ;;  %5316 = vpow2.f32 %v4267_v10 }
 0x337   : > { %v5299_v23 = vpop.eup %5298  ;;  %5318 = vpow2.f32 %v4268_v11  ;;  %v1119_v5 = vadd.f32 1.0, %v5297_v24 }
 0x338   : > { %v5301_v29 = vpop.eup %5300  ;;  %5320 = vpow2.f32 %v4269_v14  ;;  %v1120_v62 = vadd.f32 1.0, %v5299_v23 }
 0x339   : > { %v5303_v0 = vpop.eup %5302  ;;  %5322 = vpow2.f32 %v4270_v18 }
 0x33a   : > { %v5305_v51 = vpop.eup %5304  ;;  %5324 = vpow2.f32 %v4271_v47  ;;  %v1111_v47 = vadd.f32 1.0, %v5281_v28  ;;  %v1116_v28 = vadd.f32 1.0, %v5291_v31  ;;  %v1121_v31 = vadd.f32 1.0, %v5301_v29 }
 0x33b   : > { %v5307_v37 = vpop.eup %5306  ;;  %5326 = vpow2.f32 %v4272_v25  ;;  %v1112_v25 = vadd.f32 1.0, %v5283_v3  ;;  %v1117_v3 = vadd.f32 1.0, %v5293_v12 }
 0x33c   : > { %v6200_v10 = vpop.eup %5308  ;;  %5328 = vpow2.f32 %v4273_v4  ;;  %v1124_v29 = vadd.f32 1.0, %v5307_v37 }
 0x33d   : > { %v6202_v11 = vpop.eup %5310  ;;  %5330 = vrcp.f32 %v1104_v7 }
 0x33e   : > { %v6204_v14 = vpop.eup %5312  ;;  %5332 = vrcp.f32 %v1105_v8  ;;  %v1118_v8 = vadd.f32 1.0, %v5295_v16  ;;  %v1122_v16 = vadd.f32 1.0, %v5303_v0 }
 0x33f   : > { %v6206_v18 = vpop.eup %5314  ;;  %5334 = vrcp.f32 %v1106_v1 }
 0x340   : > { %v6208_v15 = vpop.eup %5316  ;;  %5336 = vrcp.f32 %v1107_v2 }
 0x341   : > { %v6210_v17 = vpop.eup %5318  ;;  %5338 = vrcp.f32 %v1108_v21 }
 0x342   : > { %v6212_v19 = vpop.eup %5320  ;;  %5340 = vrcp.f32 %v1109_v22 }
 0x343   : > { %v6214_v4 = vpop.eup %5322  ;;  %5342 = vrcp.f32 %v1110_v13 }
 0x344   : > { %v6216_v7 = vpop.eup %5324  ;;  %5344 = vrcp.f32 %v1111_v47 }
 0x345   : > { %v6218_v1 = vpop.eup %5326  ;;  %5346 = vrcp.f32 %v1112_v25 }
 0x346   : > { %v6220_v2 = vpop.eup %5328  ;;  %5348 = vrcp.f32 %v1113_v36  ;;  %v1123_v36 = vadd.f32 1.0, %v5305_v51 }
 0x347   : > { %v5331_v21 = vpop.eup %5330  ;;  %5350 = vrcp.f32 %v1114_v58  ;;  %v1125_v58 = vadd.f32 1.0, %v6200_v10 }
 0x348   : > { %v5333_v22 = vpop.eup %5332  ;;  %5352 = vrcp.f32 %v1115_v35  ;;  %v1200_v26 = vmul.f32 %v5331_v21, %v6104_v32  ;;  %v1681_v21 = vsel %vm1467_vm3, %v6049_v39, 0  ;;  %v2825_v39 = vsel %vm1467_vm3, %v6058_v44, 0 }
 0x349   : > { %v5335_v13 = vpop.eup %5334  ;;  %5354 = vrcp.f32 %v1116_v28  ;;  %v1201_v9 = vmul.f32 %v5333_v22, %v6106_v48 }
 0x34a   : > { %v5337_v47 = vpop.eup %5336  ;;  %5356 = vrcp.f32 %v1117_v3  ;;  %v1202_v25 = vmul.f32 %v5335_v13, %v6108_v60  ;;  %1288 = vst.msk [vmem:[#allocation2 + $0x19] sm:$0xff] %vm457_vm0, %v1200_v26  ;;  %v1129_v3 = vadd.f32 1.0, %v6208_v15  ;;  %v1131_v26 = vadd.f32 1.0, %v6212_v19 }
 0x34b   : > { %v5339_v12 = vpop.eup %5338  ;;  %5358 = vrcp.f32 %v1118_v8  ;;  %v1203_v24 = vmul.f32 %v5337_v47, %v6110_v27  ;;  %1289 = vst.msk [vmem:[#allocation2 + $0x21] sm:$0xff] %vm457_vm0, %v1201_v9  ;;  %v1132_v9 = vadd.f32 1.0, %v6214_v4  ;;  %v6267_v47 = vld [vmem:[%s6892_s5 + $0x8] sm:$0xf]  ;;  %v1133_v4 = vadd.f32 1.0, %v6216_v7 }
 0x34c   : > { %v5341_v32 = vpop.eup %5340  ;;  %5360 = vrcp.f32 %v1119_v5  ;;  %v1204_v23 = vmul.f32 %v5339_v12, %v6112_v40  ;;  %1290 = vst.msk [vmem:[#allocation2 + $0x31] sm:$0xff] %vm457_vm0, %v1202_v25  ;;  %v1126_v40 = vadd.f32 1.0, %v6202_v11  ;;  %v6275_v25 = vld [vmem:[%s6892_s5 + $0x18] sm:$0xf] }
 0x34d   : > { %v5343_v48 = vpop.eup %5342  ;;  %5362 = vrcp.f32 %v1120_v62  ;;  %v1205_v60 = vmul.f32 %v5341_v32, %v6114_v53  ;;  %1291 = vst.msk [vmem:[#allocation2 + $0x39] sm:$0xff] %vm457_vm0, %v1203_v24  ;;  %v1127_v53 = vadd.f32 1.0, %v6204_v14  ;;  %v1135_v32 = vadd.f32 1.0, %v6220_v2 }
 0x34e   : > { %v5345_v0 = vpop.eup %5344  ;;  %5364 = vrcp.f32 %v1121_v31  ;;  %v1206_v27 = vmul.f32 %v5343_v48, %v6116_v20  ;;  %1292 = vst.msk [vmem:[#allocation2 + $0x49] sm:$0xff] %vm457_vm0, %v1204_v23  ;;  %v1128_v20 = vadd.f32 1.0, %v6206_v18  ;;  %v1130_v18 = vadd.f32 1.0, %v6210_v17 }
 0x34f   : > { %v5347_v51 = vpop.eup %5346  ;;  %5366 = vrcp.f32 %v1122_v16  ;;  %v1207_v35 = vmul.f32 %v5345_v0, %v6118_v34  ;;  %1293 = vst.msk [vmem:[#allocation2 + $0x51] sm:$0xff] %vm457_vm0, %v1205_v60  ;;  %v1134_v16 = vadd.f32 1.0, %v6218_v1 }
 0x350   : > { %v5349_v37 = vpop.eup %5348  ;;  %5368 = vrcp.f32 %v1123_v36  ;;  %v1208_v62 = vmul.f32 %v5347_v51, %v6120_v50  ;;  %1294 = vst.msk [vmem:[#allocation2 + $0x61] sm:$0xff] %vm457_vm0, %v1206_v27 }
 0x351   : > { %v5351_v10 = vpop.eup %5350  ;;  %5370 = vrcp.f32 %v1124_v29  ;;  %v1209_v28 = vmul.f32 %v5349_v37, %v6122_v63  ;;  %1295 = vst.msk [vmem:[#allocation2 + $0x69] sm:$0xff] %vm457_vm0, %v1207_v35  ;;  %v1371_v11 = vld [vmem:[#allocation2 + $0x19] sm:$0xff] }
 0x352   : > { %v5353_v34 = vpop.eup %5352  ;;  %5372 = vrcp.f32 %v1125_v58  ;;  %v1210_v14 = vmul.f32 %v5351_v10, %v6124_v30  ;;  %1296 = vst.msk [vmem:[#allocation2 + $0x79] sm:$0xff] %vm457_vm0, %v1208_v62  ;;  %v1372_v50 = vld [vmem:[#allocation2 + $0x21] sm:$0xff] }
 0x353   : > { %v5355_v8 = vpop.eup %5354  ;;  %5374 = vrcp.f32 %v1126_v40  ;;  %v1211_v63 = vmul.f32 %v5353_v34, %v6126_v33  ;;  %1297 = vst.msk [vmem:[#allocation2 + $0x81] sm:$0xff] %vm457_vm0, %v1209_v28  ;;  %v1402_v22 = vpack.c.bf16 %v1372_v50, %v1371_v11  ;;  %v1373_v5 = vld [vmem:[#allocation2 + $0x31] sm:$0xff] }
 0x354   : > { %v5357_v15 = vpop.eup %5356  ;;  %5376 = vrcp.f32 %v1127_v53  ;;  %v1212_v30 = vmul.f32 %v5355_v8, %v6128_v38  ;;  %1298 = vst.msk [vmem:[#allocation2 + $0x91] sm:$0xff] %vm457_vm0, %v1210_v14  ;;  %v1374_v13 = vld [vmem:[#allocation2 + $0x39] sm:$0xff]  ;;  %v6923_v8 = vld [vmem:[#allocation13_spill] sm:$0xff] }
 0x355   : > { %v5359_v17 = vpop.eup %5358  ;;  %5378 = vrcp.f32 %v1128_v20  ;;  %v1213_v33 = vmul.f32 %v5357_v15, %v6130_v41  ;;  %1299 = vst.msk [vmem:[#allocation2 + $0x99] sm:$0xff] %vm457_vm0, %v1211_v63  ;;  %4625 = vmatmul.mubr.msk.bf16.vlgmr.msra.gmra.mrb[8].mxu1 %vm457_vm0, %v1402_v22  ;;  %4760 = vmatprep.mubr.msk.bf16.mxu0 %vm457_vm0, %v1402_v22  ;;  %v6262_v19 = vpack.c.bf16 %v1374_v13, %v1373_v5  ;;  %v2436_v38 = vld [vmem:[#allocation2 + $0x49] sm:$0xff]  ;;  %v6925_v15 = vld [vmem:[#allocation15_spill] sm:$0xff]  ;;  %v6926_v13 = vld [vmem:[#allocation16_spill] sm:$0xff] }
 0x356   : > { %v5361_v44 = vpop.eup %5360  ;;  %5380 = vrcp.f32 %v1129_v3  ;;  %v1214_v41 = vmul.f32 %v5359_v17, %v6132_v42  ;;  %1300 = vst.msk [vmem:[#allocation2 + $0xa9] sm:$0xff] %vm457_vm0, %v1212_v30  ;;  %4657 = vmatpush3.bf16.msra.mxu1 %v1681_v21  ;;  %v2437_v31 = vld [vmem:[#allocation2 + $0x51] sm:$0xff]  ;;  %v6922_v3 = vld [vmem:[#allocation12_spill] sm:$0xff] }
 0x357   : > { %v5363_v12 = vpop.eup %5362  ;;  %5382 = vrcp.f32 %v1130_v18  ;;  %v1215_v24 = vmul.f32 %v5361_v44, %v6134_v43  ;;  %1301 = vst.msk [vmem:[#allocation2 + $0xb1] sm:$0xff] %vm457_vm0, %v1213_v33  ;;  %4628 = vmatprep.mubr.msk.bf16.mxu1 %vm457_vm0, %v6262_v19  ;;  %4761 = vmatmul.mubr.msk.bf16.vlgmr.msra.gmra.mrb[4].mxu0 %vm457_vm0, %v6262_v19  ;;  %v6284_v42 = vpack.c.bf16 %v2437_v31, %v2436_v38  ;;  %v1377_v23 = vld [vmem:[#allocation2 + $0x61] sm:$0xff]  ;;  %v6924_v22 = vld [vmem:[#allocation14_spill] sm:$0xff] }
 0x358   : > { %v5365_v7 = vpop.eup %5364  ;;  %5384 = vrcp.f32 %v1131_v26  ;;  %v1216_v36 = vmul.f32 %v5363_v12, %v6136_v45  ;;  %1302 = vst.msk [vmem:[#allocation2 + $0xc1] sm:$0xff] %vm457_vm0, %v1214_v41  ;;  %4793 = vmatpush3.bf16.msra.mxu0 %v2825_v39  ;;  %5205 = vmatprep.subr.msk.bf16.mxu1 %vm1467_vm3, %v6267_v47  ;;  %v1378_v2 = vld [vmem:[#allocation2 + $0x69] sm:$0xff]  ;;  %v2726_v12 = vld [vmem:[#allocation2 + $0x1a] sm:$0xff] }
 0x359   : > { %v5367_v43 = vpop.eup %5366  ;;  %5386 = vrcp.f32 %v1132_v9  ;;  %v1217_v1 = vmul.f32 %v5365_v7, %v6138_v46  ;;  %1303 = vst.msk [vmem:[#allocation2 + $0xc9] sm:$0xff] %vm457_vm0, %v1215_v24  ;;  %4764 = vmatprep.mubr.msk.bf16.mxu0 %vm457_vm0, %v6284_v42  ;;  %5210 = vmatprep.subr.msk.bf16.mxu0 %vm1467_vm3, %v6275_v25  ;;  %v2440_v60 = vld [vmem:[#allocation2 + $0x79] sm:$0xff]  ;;  %v6303_v51 = vpack.c.bf16 %v1378_v2, %v1377_v23 }
 0x35a   : > { %v5369_v45 = vpop.eup %5368  ;;  %5388 = vrcp.f32 %v1133_v4  ;;  %v1218_v48 = vmul.f32 %v5367_v43, %v6140_v49  ;;  %1304 = vst.msk [vmem:[#allocation2 + $0xd9] sm:$0xff] %vm457_vm0, %v1216_v36  ;;  %v2441_v0 = vld [vmem:[#allocation2 + $0x81] sm:$0xff]  ;;  %v2728_v23 = vld [vmem:[#allocation2 + $0x32] sm:$0xff] }
 0x35b   : > { %v5371_v29 = vpop.eup %5370  ;;  %5390 = vrcp.f32 %v1134_v16  ;;  %v1219_v46 = vmul.f32 %v5369_v45, %v6142_v52  ;;  %1305 = vst.msk [vmem:[#allocation2 + $0xe1] sm:$0xff] %vm457_vm0, %v1217_v1  ;;  %v1381_v20 = vld [vmem:[#allocation2 + $0x91] sm:$0xff]  ;;  %v2727_v16 = vld [vmem:[#allocation2 + $0x22] sm:$0xff]  ;;  %v2729_v2 = vld [vmem:[#allocation2 + $0x3a] sm:$0xff] }
 0x35c   : > { %v5373_v58 = vpop.eup %5372  ;;  %5392 = vrcp.f32 %v1135_v32  ;;  %v1220_v27 = vmul.f32 %v5371_v29, %v6144_v54  ;;  %1306 = vst.msk [vmem:[#allocation2 + $0xf1] sm:$0xff] %vm457_vm0, %v1218_v48  ;;  %v6313_v54 = vpack.c.bf16 %v2441_v0, %v2440_v60  ;;  %v6369_v7 = vpack.c.bf16 %v2727_v16, %v2726_v12  ;;  %v2730_v48 = vld [vmem:[#allocation2 + $0x4a] sm:$0xff]  ;;  %v2731_v29 = vld [vmem:[#allocation2 + $0x52] sm:$0xff] }
 0x35d   : > { %v5375_v40 = vpop.eup %5374  ;;  %v1221_v49 = vmul.f32 %v5373_v58, %v6146_v55  ;;  %1307 = vst.msk [vmem:[#allocation2 + $0xf9] sm:$0xff] %vm457_vm0, %v1219_v46  ;;  %4629 = vmatmul.mubr.msk.bf16.gmra.mrb[12].mxu1 %vm457_vm0, %v6284_v42  ;;  %v2444_v14 = vld [vmem:[#allocation2 + $0xa9] sm:$0xff]  ;;  %v6381_v60 = vpack.c.bf16 %v2729_v2, %v2728_v23  ;;  %v3120_v0 = vsel %vm1467_vm3, %v6275_v25, 0  ;;  %v6387_v58 = vpack.c.bf16 %v2731_v29, %v2730_v48 }
 0x35e   : > { %v5377_v52 = vpop.eup %5376  ;;  %v1222_v35 = vmul.f32 %v5375_v40, %v6148_v56  ;;  %1308 = vst.msk [vmem:[#allocation2 + $0x109] sm:$0xff] %vm457_vm0, %v1220_v27  ;;  %4632 = vmatprep.mubr.msk.bf16.mxu1 %vm457_vm0, %v6303_v51  ;;  %v2445_v50 = vld [vmem:[#allocation2 + $0xb1] sm:$0xff]  ;;  %v6392_v27 = vld [vmem:[%s6892_s5 + $0x1c] sm:$0xf] }
 0x35f   : > { %v5379_v37 = vpop.eup %5378  ;;  %v1223_v53 = vmul.f32 %v5377_v52, %v6150_v57  ;;  %1309 = vst.msk [vmem:[#allocation2 + $0x111] sm:$0xff] %vm457_vm0, %v1221_v49  ;;  %4765 = vmatmul.mubr.msk.bf16.gmra.mrb[8].mxu0 %vm457_vm0, %v6303_v51  ;;  %v1382_v57 = vld [vmem:[#allocation2 + $0x99] sm:$0xff]  ;;  %v6341_v30 = vpack.c.bf16 %v2445_v50, %v2444_v14  ;;  %v1385_v17 = vld [vmem:[#allocation2 + $0xc1] sm:$0xff]  ;;  %v1327_v16 = vld [vmem:[#allocation2 + $0x50] sm:$0xff] }
 0x360   : > { %v5381_v55 = vpop.eup %5380  ;;  %v1224_v62 = vmul.f32 %v5379_v37, %v6152_v59  ;;  %1310 = vst.msk [vmem:[#allocation2 + $0x121] sm:$0xff] %vm457_vm0, %v1222_v35  ;;  %4768 = vmatprep.mubr.msk.bf16.mxu0 %vm457_vm0, %v6313_v54  ;;  %v1386_v9 = vld [vmem:[#allocation2 + $0xc9] sm:$0xff] }
 0x361   : > { %v5383_v56 = vpop.eup %5382  ;;  %v1225_v10 = vmul.f32 %v5381_v55, %v6154_v61  ;;  %1311 = vst.msk [vmem:[#allocation2 + $0x129] sm:$0xff] %vm457_vm0, %v1223_v53  ;;  %v6331_v61 = vpack.c.bf16 %v1382_v57, %v1381_v20  ;;  %v2448_v33 = vld [vmem:[#allocation2 + $0xd9] sm:$0xff]  ;;  %v6351_v44 = vpack.c.bf16 %v1386_v9, %v1385_v17  ;;  %v2732_v35 = vld [vmem:[#allocation2 + $0x62] sm:$0xff]  ;;  %v2733_v37 = vld [vmem:[#allocation2 + $0x6a] sm:$0xff]  ;;  %v1943_v17 = vsel %vm1467_vm3, %v6267_v47, 0 }
 0x362   : > { %v5385_v28 = vpop.eup %5384  ;;  %v1226_v11 = vmul.f32 %v5383_v56, %v6156_v6  ;;  %1312 = vst.msk [vmem:[#allocation2 + $0x139] sm:$0xff] %vm457_vm0, %v1224_v62  ;;  %v2449_v38 = vld [vmem:[#allocation2 + $0xe1] sm:$0xff] }
 0x363   : > { %v5387_v34 = vpop.eup %5386  ;;  %v1227_v59 = vmul.f32 %v5385_v28, %v6922_v3  ;;  %1313 = vst.msk [vmem:[#allocation2 + $0x141] sm:$0xff] %vm457_vm0, %v1225_v10  ;;  %v6357_v4 = vpack.c.bf16 %v2449_v38, %v2448_v33  ;;  %v1389_v41 = vld [vmem:[#allocation2 + $0xf1] sm:$0xff]  ;;  %v2734_v55 = vld [vmem:[#allocation2 + $0x7a] sm:$0xff]  ;;  %v2735_v62 = vld [vmem:[#allocation2 + $0x82] sm:$0xff]  ;;  %v6406_v10 = vpack.c.bf16 %v2733_v37, %v2732_v35 }
 0x364   : > { %v5389_v21 = vpop.eup %5388  ;;  %v1228_v18 = vmul.f32 %v5387_v34, %v6923_v8  ;;  %1314 = vst.msk [vmem:[#allocation2 + $0x151] sm:$0xff] %vm457_vm0, %v1226_v11  ;;  %v1390_v31 = vld [vmem:[#allocation2 + $0xf9] sm:$0xff]  ;;  %v6410_v20 = vpack.c.bf16 %v2735_v62, %v2734_v55  ;;  %v1321_v28 = vld [vmem:[#allocation2 + $0x8] sm:$0xff] }
 0x365   : > { %v5391_v63 = vpop.eup %5390  ;;  %v1229_v5 = vmul.f32 %v5389_v21, %v6924_v22  ;;  %1315 = vst.msk [vmem:[#allocation2 + $0x159] sm:$0xff] %vm457_vm0, %v1227_v59  ;;  %4633 = vmatmul.mubr.msk.bf16.gmra.mrb[16].mxu1 %vm457_vm0, %v6313_v54  ;;  %v6363_v24 = vpack.c.bf16 %v1390_v31, %v1389_v41  ;;  %v1391_v32 = vld [vmem:[#allocation2 + $0x109] sm:$0xff]  ;;  %v1320_v57 = vld [vmem:[#allocation2] sm:$0xff]  ;;  %v2736_v3 = vld [vmem:[#allocation2 + $0x92] sm:$0xff] }
 0x366   : > { %v5393_v6 = vpop.eup %5392  ;;  %v1230_v26 = vmul.f32 %v5391_v63, %v6925_v15  ;;  %1316 = vst.msk [vmem:[#allocation2 + $0x169] sm:$0xff] %vm457_vm0, %v1228_v18  ;;  %4636 = vmatprep.mubr.msk.bf16.mxu1 %vm457_vm0, %v6331_v61  ;;  %v1392_v36 = vld [vmem:[#allocation2 + $0x111] sm:$0xff]  ;;  %v2737_v59 = vld [vmem:[#allocation2 + $0x9a] sm:$0xff]  ;;  %v1352_v14 = vpack.c.bf16 %v1321_v28, %v1320_v57  ;;  %v2743_v33 = vld [vmem:[#allocation2 + $0xe2] sm:$0xff] }
 0x367   : > { %v1231_v39 = vmul.f32 %v5393_v6, %v6926_v13  ;;  %1317 = vst.msk [vmem:[#allocation2 + $0x171] sm:$0xff] %vm457_vm0, %v1229_v5  ;;  %4769 = vmatmul.mubr.msk.bf16.gmra.mrb[12].mxu0 %vm457_vm0, %v6331_v61  ;;  %v1393_v43 = vld [vmem:[#allocation2 + $0x121] sm:$0xff]  ;;  %v6375_v45 = vpack.c.bf16 %v1392_v36, %v1391_v32  ;;  %v2738_v21 = vld [vmem:[#allocation2 + $0xaa] sm:$0xff]  ;;  %v2739_v8 = vld [vmem:[#allocation2 + $0xb2] sm:$0xff]  ;;  %v6420_v18 = vpack.c.bf16 %v2737_v59, %v2736_v3 }
 0x368   : > { %1318 = vst.msk [vmem:[#allocation2 + $0x181] sm:$0xff] %vm457_vm0, %v1230_v26  ;;  %4772 = vmatprep.mubr.msk.bf16.mxu0 %vm457_vm0, %v6341_v30  ;;  %v1394_v1 = vld [vmem:[#allocation2 + $0x129] sm:$0xff]  ;;  %v6422_v63 = vpack.c.bf16 %v2739_v8, %v2738_v21  ;;  %v1322_v22 = vld [vmem:[#allocation2 + $0x18] sm:$0xff]  ;;  %v1323_v5 = vld [vmem:[#allocation2 + $0x20] sm:$0xff] }
 0x369   : > { %1319 = vst.msk [vmem:[#allocation2 + $0x189] sm:$0xff] %vm457_vm0, %v1231_v39  ;;  %v6377_v46 = vpack.c.bf16 %v1394_v1, %v1393_v43  ;;  %v1395_v40 = vld [vmem:[#allocation2 + $0x139] sm:$0xff]  ;;  %v1324_v6 = vld [vmem:[#allocation2 + $0x30] sm:$0xff]  ;;  %v2740_v26 = vld [vmem:[#allocation2 + $0xc2] sm:$0xff]  ;;  %v6429_v39 = vpack.c.bf16 %v1323_v5, %v1322_v22 }
 0x36a   : > { %v1396_v49 = vld [vmem:[#allocation2 + $0x141] sm:$0xff]  ;;  %v1325_v15 = vld [vmem:[#allocation2 + $0x38] sm:$0xff]  ;;  %v2741_v13 = vld [vmem:[#allocation2 + $0xca] sm:$0xff] }
 0x36b   : > { %v1397_v25 = vld [vmem:[#allocation2 + $0x151] sm:$0xff]  ;;  %v6400_v53 = vpack.c.bf16 %v1396_v49, %v1395_v40  ;;  %v2742_v9 = vld [vmem:[#allocation2 + $0xda] sm:$0xff]  ;;  %v6433_v38 = vpack.c.bf16 %v1325_v15, %v1324_v6  ;;  %v6438_v41 = vld [vmem:[%s6892_s5 + $0xc] sm:$0xf]  ;;  %v6442_v31 = vpack.c.bf16 %v2741_v13, %v2740_v26 }
 0x36c   : > { %v1398_v52 = vld [vmem:[#allocation2 + $0x159] sm:$0xff]  ;;  %v6446_v12 = vpack.c.bf16 %v2743_v33, %v2742_v9  ;;  %v1326_v47 = vld [vmem:[#allocation2 + $0x48] sm:$0xff] }
 0x36d   : > { %4637 = vmatmul.mubr.msk.bf16.gmra.mrb[20].mxu1 %vm457_vm0, %v6341_v30  ;;  %v6402_v56 = vpack.c.bf16 %v1398_v52, %v1397_v25  ;;  %v1399_v11 = vld [vmem:[#allocation2 + $0x169] sm:$0xff]  ;;  %v1328_v32 = vld [vmem:[#allocation2 + $0x60] sm:$0xff]  ;;  %v2744_v43 = vld [vmem:[#allocation2 + $0xf2] sm:$0xff]  ;;  %v6454_v23 = vpack.c.bf16 %v1327_v16, %v1326_v47 }
 0x36e   : > { %4640 = vmatprep.mubr.msk.bf16.mxu1 %vm457_vm0, %v6351_v44  ;;  %v1400_v34 = vld [vmem:[#allocation2 + $0x171] sm:$0xff]  ;;  %v1329_v36 = vld [vmem:[#allocation2 + $0x68] sm:$0xff]  ;;  %v2745_v1 = vld [vmem:[#allocation2 + $0xfa] sm:$0xff] }
 0x36f   : > { %4773 = vmatmul.mubr.msk.bf16.gmra.mrb[16].mxu0 %vm457_vm0, %v6351_v44  ;;  %v6416_v50 = vpack.c.bf16 %v1400_v34, %v1399_v11  ;;  %v2746_v2 = vld [vmem:[#allocation2 + $0x10a] sm:$0xff]  ;;  %v2747_v48 = vld [vmem:[#allocation2 + $0x112] sm:$0xff]  ;;  %v6456_v29 = vpack.c.bf16 %v1329_v36, %v1328_v32  ;;  %v1331_v25 = vld [vmem:[#allocation2 + $0x80] sm:$0xff] }
 0x370   : > { %4776 = vmatprep.mubr.msk.bf16.mxu0 %vm457_vm0, %v6357_v4  ;;  %v6464_v40 = vpack.c.bf16 %v2747_v48, %v2746_v2  ;;  %v1330_v49 = vld [vmem:[#allocation2 + $0x78] sm:$0xff]  ;;  %v1332_v52 = vld [vmem:[#allocation2 + $0x90] sm:$0xff]  ;;  %v2748_v37 = vld [vmem:[#allocation2 + $0x122] sm:$0xff] }
 0x371   : > { %v1333_v35 = vld [vmem:[#allocation2 + $0x98] sm:$0xff]  ;;  %v2749_v55 = vld [vmem:[#allocation2 + $0x12a] sm:$0xff]  ;;  %v6470_v62 = vpack.c.bf16 %v1331_v25, %v1330_v49  ;;  %v2751_v28 = vld [vmem:[#allocation2 + $0x142] sm:$0xff] }
 0x372   : > { %v2750_v57 = vld [vmem:[#allocation2 + $0x13a] sm:$0xff]  ;;  %v6472_v11 = vpack.c.bf16 %v1333_v35, %v1332_v52  ;;  %v6476_v34 = vpack.c.bf16 %v2749_v55, %v2748_v37  ;;  %v1334_v59 = vld [vmem:[#allocation2 + $0xa8] sm:$0xff]  ;;  %v2752_v22 = vld [vmem:[#allocation2 + $0x152] sm:$0xff] }
 0x373   : > { %v6480_v3 = vpack.c.bf16 %v2751_v28, %v2750_v57  ;;  %v1336_v21 = vld [vmem:[#allocation2 + $0xc0] sm:$0xff]  ;;  %v1337_v8 = vld [vmem:[#allocation2 + $0xc8] sm:$0xff]  ;;  %v2755_v26 = vld [vmem:[#allocation2 + $0x172] sm:$0xff]  ;;  %v3414_v57 = vsel %vm1467_vm3, %v6392_v27, 0 }
 0x374   : > { %v2753_v5 = vld [vmem:[#allocation2 + $0x15a] sm:$0xff]  ;;  %v2754_v15 = vld [vmem:[#allocation2 + $0x16a] sm:$0xff]  ;;  %v6488_v13 = vpack.c.bf16 %v1337_v8, %v1336_v21  ;;  %v2756_v36 = vld [vmem:[#allocation2 + $0x182] sm:$0xff] }
 0x375   : > { %4641 = vmatmul.mubr.msk.bf16.gmra.mrb[24].mxu1 %vm457_vm0, %v6357_v4  ;;  %v6496_v9 = vpack.c.bf16 %v2755_v26, %v2754_v15  ;;  %v1338_v33 = vld [vmem:[#allocation2 + $0xd8] sm:$0xff]  ;;  %v1339_v47 = vld [vmem:[#allocation2 + $0xe0] sm:$0xff]  ;;  %v1340_v16 = vld [vmem:[#allocation2 + $0xf0] sm:$0xff] }
 0x376   : > { %4644 = vmatprep.mubr.msk.bf16.mxu1 %vm457_vm0, %v6363_v24  ;;  %v1341_v32 = vld [vmem:[#allocation2 + $0xf8] sm:$0xff]  ;;  %v1342_v49 = vld [vmem:[#allocation2 + $0x108] sm:$0xff]  ;;  %v1343_v25 = vld [vmem:[#allocation2 + $0x110] sm:$0xff] }
 0x377   : > { %4777 = vmatmul.mubr.msk.bf16.gmra.mrb[20].mxu0 %vm457_vm0, %v6363_v24  ;;  %v6504_v2 = vpack.c.bf16 %v1341_v32, %v1340_v16  ;;  %v1344_v52 = vld [vmem:[#allocation2 + $0x120] sm:$0xff]  ;;  %v1345_v35 = vld [vmem:[#allocation2 + $0x128] sm:$0xff]  ;;  %v6516_v37 = vpack.c.bf16 %v1343_v25, %v1342_v49  ;;  %v1348_v21 = vld [vmem:[#allocation2 + $0x150] sm:$0xff]  ;;  %v2237_v32 = vsel %vm1467_vm3, %v6438_v41, 0 }
 0x378   : > { %4794 = vmatprep.mubr.msk.bf16.mxu0 %vm457_vm0, %v6369_v7  ;;  %v6518_v55 = vpack.c.bf16 %v1345_v35, %v1344_v52  ;;  %v4409_v28 = vld [vmem:[%s6892_s5 + $0x20] sm:$0xf]  ;;  %v1349_v8 = vld [vmem:[#allocation2 + $0x158] sm:$0xff]  ;;  %v1845_v15 = vld [vmem:[#allocation2 + $0xa] sm:$0xff] }
 0x379   : > { %v1350_v26 = vld [vmem:[#allocation2 + $0x168] sm:$0xff]  ;;  %v3051_v49 = vld [vmem:[#allocation2 + $0x198] sm:$0xff]  ;;  %v3052_v25 = vld [vmem:[#allocation2 + $0x1a0] sm:$0xff]  ;;  %v3708_v35 = vsel %vm1467_vm3, %v4409_v28, 0 }
 0x37a   : > { %v3068_v52 = vpack.c.bf16 %v3052_v25, %v3051_v49 }
 0x37d   : > { %4645 = vmatmul.mubr.msk.bf16.gmra.mrb[28].mxu1 %vm457_vm0, %v6375_v45 }
 0x37e   : > { %4648 = vmatprep.mubr.msk.bf16.mxu1 %vm457_vm0, %v6377_v46 }
 0x37f   : > { %4795 = vmatmul.mubr.msk.bf16.vlgmr.msra.gmra.mrb[4].mxu0 %vm457_vm0, %v6381_v60 }
 0x380   : > { %4798 = vmatprep.mubr.msk.bf16.mxu0 %vm457_vm0, %v6387_v58  ;;  %4827 = vmatpush3.bf16.msra.mxu0 %v3120_v0  ;;  %v6460_v0 = vpack.c.bf16 %v2745_v1, %v2744_v43  ;;  %v2757_v43 = vld [vmem:[#allocation2 + $0x18a] sm:$0xff]  ;;  %v6502_v1 = vpack.c.bf16 %v1339_v47, %v1338_v33 }
 0x381   : > { %5211 = vmatprep.subr.msk.bf16.mxu0 %vm1467_vm3, %v6392_v27  ;;  %v6508_v48 = vpack.c.bf16 %v2757_v43, %v2756_v36  ;;  %v1351_v33 = vld [vmem:[#allocation2 + $0x170] sm:$0xff] }
 0x382   : > { %v6546_v16 = vpack.c.bf16 %v1351_v33, %v1350_v26  ;;  %v5398_v36 = vld [vmem:[%s6892_s5 + $0x10] sm:$0xf] }
 0x385   : > { %4649 = vmatmul.mubr.msk.bf16.gmra.mrb[32].mxu1 %vm457_vm0, %v6400_v53 }
 0x386   : > { %4652 = vmatprep.mubr.msk.bf16.mxu1 %vm457_vm0, %v6402_v56 }
 0x387   : > { %4799 = vmatmul.mubr.msk.bf16.gmra.mrb[8].mxu0 %vm457_vm0, %v6406_v10 }
 0x388   : > { %4802 = vmatprep.mubr.msk.bf16.mxu0 %vm457_vm0, %v6410_v20 }
 0x38d   : > { %4653 = vmatmul.mubr.msk.bf16.gmra.mrb[36].mxu1 %vm457_vm0, %v6416_v50 }
 0x38e   : > { %4658 = vmatprep.mubr.msk.bf16.mxu1 %vm457_vm0, %v1352_v14  ;;  %v1335_v14 = vld [vmem:[#allocation2 + $0xb0] sm:$0xff] }
 0x38f   : > { %4803 = vmatmul.mubr.msk.bf16.gmra.mrb[12].mxu0 %vm457_vm0, %v6420_v18  ;;  %v6486_v6 = vpack.c.bf16 %v1335_v14, %v1334_v59  ;;  %v1346_v59 = vld [vmem:[#allocation2 + $0x138] sm:$0xff]  ;;  %v1347_v14 = vld [vmem:[#allocation2 + $0x140] sm:$0xff] }
 0x390   : > { %4806 = vmatprep.mubr.msk.bf16.mxu0 %vm457_vm0, %v6422_v63  ;;  %v6534_v27 = vpack.c.bf16 %v1347_v14, %v1346_v59 }
 0x395   : > { %4659 = vmatmul.mubr.msk.bf16.vlgmr.msra.gmra.mrb[8].mxu1 %vm457_vm0, %v6429_v39 }
 0x396   : > { %4691 = vmatpush3.bf16.msra.mxu1 %v1943_v17  ;;  %4662 = vmatprep.mubr.msk.bf16.mxu1 %vm457_vm0, %v6433_v38  ;;  %v6492_v17 = vpack.c.bf16 %v2753_v5, %v2752_v22  ;;  %v6536_v22 = vpack.c.bf16 %v1349_v8, %v1348_v21  ;;  %v1844_v5 = vld [vmem:[#allocation2 + $0x2] sm:$0xff] }
 0x397   : > { %4807 = vmatmul.mubr.msk.bf16.gmra.mrb[16].mxu0 %vm457_vm0, %v6442_v31  ;;  %5206 = vmatprep.subr.msk.bf16.mxu1 %vm1467_vm3, %v6438_v41  ;;  %v1876_v47 = vpack.c.bf16 %v1845_v15, %v1844_v5  ;;  %v3050_v41 = vld [vmem:[#allocation2 + $0x188] sm:$0xff] }
 0x398   : > { %4810 = vmatprep.mubr.msk.bf16.mxu0 %vm457_vm0, %v6446_v12 }
 0x39d   : > { %4663 = vmatmul.mubr.msk.bf16.gmra.mrb[12].mxu1 %vm457_vm0, %v6454_v23 }
 0x39e   : > { %4666 = vmatprep.mubr.msk.bf16.mxu1 %vm457_vm0, %v6456_v29 }
 0x39f   : > { %4811 = vmatmul.mubr.msk.bf16.gmra.mrb[20].mxu0 %vm457_vm0, %v6460_v0 }
 0x3a0   : > { %4814 = vmatprep.mubr.msk.bf16.mxu0 %vm457_vm0, %v6464_v40 }
 0x3a5   : > { %4667 = vmatmul.mubr.msk.bf16.gmra.mrb[16].mxu1 %vm457_vm0, %v6470_v62 }
 0x3a6   : > { %4670 = vmatprep.mubr.msk.bf16.mxu1 %vm457_vm0, %v6472_v11 }
 0x3a7   : > { %4815 = vmatmul.mubr.msk.bf16.gmra.mrb[24].mxu0 %vm457_vm0, %v6476_v34 }
 0x3a8   : > { %4818 = vmatprep.mubr.msk.bf16.mxu0 %vm457_vm0, %v6480_v3 }
 0x3ad   : > { %4671 = vmatmul.mubr.msk.bf16.gmra.mrb[20].mxu1 %vm457_vm0, %v6486_v6 }
 0x3ae   : > { %4674 = vmatprep.mubr.msk.bf16.mxu1 %vm457_vm0, %v6488_v13 }
 0x3af   : > { %4819 = vmatmul.mubr.msk.bf16.gmra.mrb[28].mxu0 %vm457_vm0, %v6492_v17 }
 0x3b0   : > { %4822 = vmatprep.mubr.msk.bf16.mxu0 %vm457_vm0, %v6496_v9 }
 0x3b5   : > { %4675 = vmatmul.mubr.msk.bf16.gmra.mrb[24].mxu1 %vm457_vm0, %v6502_v1 }
 0x3b6   : > { %4678 = vmatprep.mubr.msk.bf16.mxu1 %vm457_vm0, %v6504_v2 }
 0x3b7   : > { %4823 = vmatmul.mubr.msk.bf16.gmra.mrb[32].mxu0 %vm457_vm0, %v6508_v48 }
 0x3b8   : > { %4828 = vmatprep.mubr.msk.bf16.mxu0 %vm457_vm0, %v6433_v38 }
 0x3bd   : > { %4679 = vmatmul.mubr.msk.bf16.gmra.mrb[28].mxu1 %vm457_vm0, %v6516_v37 }
 0x3be   : > { %4682 = vmatprep.mubr.msk.bf16.mxu1 %vm457_vm0, %v6518_v55 }
 0x3bf   : > { %4829 = vmatmul.mubr.msk.bf16.vlgmr.msra.gmra.mrb[4].mxu0 %vm457_vm0, %v6454_v23 }
 0x3c0   : > { %4832 = vmatprep.mubr.msk.bf16.mxu0 %vm457_vm0, %v6456_v29  ;;  %4861 = vmatpush3.bf16.msra.mxu0 %v3414_v57 }
 0x3c1   : > { %5212 = vmatprep.subr.msk.bf16.mxu0 %vm1467_vm3, %v4409_v28 }
 0x3c5   : > { %4683 = vmatmul.mubr.msk.bf16.gmra.mrb[32].mxu1 %vm457_vm0, %v6534_v27 }
 0x3c6   : > { %4686 = vmatprep.mubr.msk.bf16.mxu1 %vm457_vm0, %v6536_v22 }
 0x3c7   : > { %4833 = vmatmul.mubr.msk.bf16.gmra.mrb[8].mxu0 %vm457_vm0, %v6470_v62 }
 0x3c8   : > { %4836 = vmatprep.mubr.msk.bf16.mxu0 %vm457_vm0, %v6472_v11 }
 0x3cd   : > { %4687 = vmatmul.mubr.msk.bf16.gmra.mrb[36].mxu1 %vm457_vm0, %v6546_v16 }
 0x3ce   : > { %4692 = vmatprep.mubr.msk.bf16.mxu1 %vm457_vm0, %v1876_v47 }
 0x3cf   : > { %4837 = vmatmul.mubr.msk.bf16.gmra.mrb[12].mxu0 %vm457_vm0, %v6486_v6 }
 0x3d0   : > { %4840 = vmatprep.mubr.msk.bf16.mxu0 %vm457_vm0, %v6488_v13 }
 0x3d5   : > { %4693 = vmatmul.mubr.msk.bf16.vlgmr.msra.gmra.mrb[8].mxu1 %vm457_vm0, %v6369_v7  ;;  %v3049_v7 = vld [vmem:[#allocation2 + $0x180] sm:$0xff] }
 0x3d6   : > { %4725 = vmatpush3.bf16.msra.mxu1 %v2237_v32  ;;  %4696 = vmatprep.mubr.msk.bf16.mxu1 %vm457_vm0, %v6381_v60  ;;  %v6589_v43 = vpack.c.bf16 %v3050_v41, %v3049_v7 }
 0x3d7   : > { %4841 = vmatmul.mubr.msk.bf16.gmra.mrb[16].mxu0 %vm457_vm0, %v6502_v1  ;;  %5208 = vmatprep.subr.msk.bf16.mxu1 %vm1467_vm3, %v5398_v36 }
 0x3d8   : > { %4844 = vmatprep.mubr.msk.bf16.mxu0 %vm457_vm0, %v6504_v2 }
 0x3dd   : > { %4697 = vmatmul.mubr.msk.bf16.gmra.mrb[12].mxu1 %vm457_vm0, %v6387_v58 }
 0x3de   : > { %4700 = vmatprep.mubr.msk.bf16.mxu1 %vm457_vm0, %v6406_v10 }
 0x3df   : > { %4845 = vmatmul.mubr.msk.bf16.gmra.mrb[20].mxu0 %vm457_vm0, %v6516_v37 }
 0x3e0   : > { %4848 = vmatprep.mubr.msk.bf16.mxu0 %vm457_vm0, %v6518_v55 }
 0x3e5   : > { %4701 = vmatmul.mubr.msk.bf16.gmra.mrb[16].mxu1 %vm457_vm0, %v6410_v20 }
 0x3e6   : > { %4704 = vmatprep.mubr.msk.bf16.mxu1 %vm457_vm0, %v6420_v18 }
 0x3e7   : > { %4849 = vmatmul.mubr.msk.bf16.gmra.mrb[24].mxu0 %vm457_vm0, %v6534_v27 }
 0x3e8   : > { %4852 = vmatprep.mubr.msk.bf16.mxu0 %vm457_vm0, %v6536_v22 }
 0x3ed   : > { %4705 = vmatmul.mubr.msk.bf16.gmra.mrb[20].mxu1 %vm457_vm0, %v6422_v63 }
 0x3ee   : > { %4708 = vmatprep.mubr.msk.bf16.mxu1 %vm457_vm0, %v6442_v31 }
 0x3ef   : > { %4853 = vmatmul.mubr.msk.bf16.gmra.mrb[28].mxu0 %vm457_vm0, %v6546_v16 }
 0x3f0   : > { %4856 = vmatprep.mubr.msk.bf16.mxu0 %vm457_vm0, %v6589_v43 }
 0x3f5   : > { %4709 = vmatmul.mubr.msk.bf16.gmra.mrb[24].mxu1 %vm457_vm0, %v6446_v12 }
 0x3f6   : > { %4712 = vmatprep.mubr.msk.bf16.mxu1 %vm457_vm0, %v6460_v0 }
 0x3f7   : > { %4857 = vmatmul.mubr.msk.bf16.gmra.mrb[32].mxu0 %vm457_vm0, %v3068_v52 }
 0x3f8   : > { %4862 = vmatprep.mubr.msk.bf16.mxu0 %vm457_vm0, %v6262_v19  ;;  %v6927_v19 = vld [vmem:[#allocation10_spill] sm:$0xff] }
 0x3fd   : > { %4713 = vmatmul.mubr.msk.bf16.gmra.mrb[28].mxu1 %vm457_vm0, %v6464_v40 }
 0x3fe   : > { %4716 = vmatprep.mubr.msk.bf16.mxu1 %vm457_vm0, %v6476_v34 }
 0x3ff   : > { %4863 = vmatmul.mubr.msk.bf16.vlgmr.msra.gmra.mrb[4].mxu0 %vm457_vm0, %v6284_v42  ;;  %v5500_v42 = vmov 0.0|0.0  }
 0x400   : > { %4866 = vmatprep.mubr.msk.bf16.mxu0 %vm457_vm0, %v6303_v51  ;;  %4895 = vmatpush3.bf16.msra.mxu0 %v3708_v35  ;;  %v3343_v51 = vld [vmem:[#allocation2 + $0x181] sm:$0xff] }
 0x405   : > { %4717 = vmatmul.mubr.msk.bf16.gmra.mrb[32].mxu1 %vm457_vm0, %v6480_v3 }
 0x406   : > { %4720 = vmatprep.mubr.msk.bf16.mxu1 %vm457_vm0, %v6492_v17 }
 0x407   : > { %4867 = vmatmul.mubr.msk.bf16.gmra.mrb[8].mxu0 %vm457_vm0, %v6313_v54  ;;  %v3344_v54 = vld [vmem:[#allocation2 + $0x189] sm:$0xff] }
 0x408   : > { %4870 = vmatprep.mubr.msk.bf16.mxu0 %vm457_vm0, %v6331_v61  ;;  %v3361_v61 = vpack.c.bf16 %v3344_v54, %v3343_v51 }
 0x40d   : > { %4721 = vmatmul.mubr.msk.bf16.gmra.mrb[36].mxu1 %vm457_vm0, %v6496_v9 }
 0x40e   : > { %4726 = vmatprep.mubr.msk.bf16.mxu1 %vm457_vm0, %v6429_v39 }
 0x40f   : > { %4871 = vmatmul.mubr.msk.bf16.gmra.mrb[12].mxu0 %vm457_vm0, %v6341_v30  ;;  %v3345_v30 = vld [vmem:[#allocation2 + $0x199] sm:$0xff] }
 0x410   : > { %4874 = vmatprep.mubr.msk.bf16.mxu0 %vm457_vm0, %v6351_v44  ;;  %v3346_v44 = vld [vmem:[#allocation2 + $0x1a1] sm:$0xff] }
 0x415   : > { %4727 = vmatmul.mubr.msk.bf16.vlgmr.msra.gmra.mrb[8].mxu1 %vm457_vm0, %v6433_v38 }
 0x416   : > { %4946 = vmatpush3.bf16.msra.mxu1 %v6927_v19  ;;  %4730 = vmatprep.mubr.msk.bf16.mxu1 %vm457_vm0, %v6454_v23 }
 0x417   : > { %4875 = vmatmul.mubr.msk.bf16.gmra.mrb[16].mxu0 %vm457_vm0, %v6357_v4  ;;  %4939 = vmatprep.subr.bf16.mxu1 %v5500_v42  ;;  %v3362_v4 = vpack.c.bf16 %v3346_v44, %v3345_v30 }
 0x418   : > { %4878 = vmatprep.mubr.msk.bf16.mxu0 %vm457_vm0, %v6363_v24  ;;  %v3903_v24 = vld [vmem:[%s389_s18] sm:$0x1]  ;;  %s5433_s18 = sshll.u32 %s5501_s17, 4  ;;  %s5434_s18 = int_to_ptr.vmem [resolvable:$false] %s5433_s18 }
 0x419   : > { %s5435_s27 = scalar_lea.vmem %s5434_s18, 1024  ;;  %p5436_p10 = scmp.lt.s32.totalorder %s6838_s20, %s5434_s18 }
 0x41a   : > { %p5437_p2 = scmp.lt.s32.totalorder %s5435_s27, %s5429_s11 }
 0x41c   : > { %p5438_p4 = por %p5437_p2, %p5436_p10 }
 0x41d   : > { %4731 = vmatmul.mubr.msk.bf16.gmra.mrb[12].mxu1 %vm457_vm0, %v6456_v29 }
 0x41e   : > { %4734 = vmatprep.mubr.msk.bf16.mxu1 %vm457_vm0, %v6470_v62  ;;  %p5439_p5 = pnand %p5438_p4, %p5432_p7 }
 0x41f   : > { %4879 = vmatmul.mubr.msk.bf16.gmra.mrb[20].mxu0 %vm457_vm0, %v6375_v45 }
 0x420   : > { %4882 = vmatprep.mubr.msk.bf16.mxu0 %vm457_vm0, %v6377_v46 }
 0x425   : > { %4735 = vmatmul.mubr.msk.bf16.gmra.mrb[16].mxu1 %vm457_vm0, %v6472_v11 }
 0x426   : > { %4738 = vmatprep.mubr.msk.bf16.mxu1 %vm457_vm0, %v6486_v6 }
 0x427   : > { %4883 = vmatmul.mubr.msk.bf16.gmra.mrb[24].mxu0 %vm457_vm0, %v6400_v53 }
 0x428   : > { %4886 = vmatprep.mubr.msk.bf16.mxu0 %vm457_vm0, %v6402_v56 }
 0x42d   : > { %4739 = vmatmul.mubr.msk.bf16.gmra.mrb[20].mxu1 %vm457_vm0, %v6488_v13 }
 0x42e   : > { %4742 = vmatprep.mubr.msk.bf16.mxu1 %vm457_vm0, %v6502_v1 }
 0x42f   : > { %4887 = vmatmul.mubr.msk.bf16.gmra.mrb[28].mxu0 %vm457_vm0, %v6416_v50 }
 0x430   : > { %4890 = vmatprep.mubr.msk.bf16.mxu0 %vm457_vm0, %v3361_v61 }
 0x435   : > { %4743 = vmatmul.mubr.msk.bf16.gmra.mrb[24].mxu1 %vm457_vm0, %v6504_v2 }
 0x436   : > { %4746 = vmatprep.mubr.msk.bf16.mxu1 %vm457_vm0, %v6516_v37 }
 0x437   : > { %4891 = vmatmul.mubr.msk.bf16.gmra.mrb[32].mxu0 %vm457_vm0, %v3362_v4 }
 0x438   : > { %4896 = vmatprep.mubr.msk.bf16.mxu0 %vm457_vm0, %v6381_v60  ;;  %v4426_v60 = vmul.f32 -1.442695, %v3903_v24 }
 0x43a   : > { %5394 = vpow2.f32 %v4426_v60 }
 0x43d   : > { %4747 = vmatmul.mubr.msk.bf16.gmra.mrb[28].mxu1 %vm457_vm0, %v6518_v55 }
 0x43e   : > { %4750 = vmatprep.mubr.msk.bf16.mxu1 %vm457_vm0, %v6534_v27 }
 0x43f   : > { %4897 = vmatmul.mubr.msk.bf16.vlgmr.msra.gmra.mrb[4].mxu0 %vm457_vm0, %v6387_v58  ;;  %v3911_v58 = vld [vmem:[%s6895_s8] sm:$0xff] }
 0x440   : > { %4900 = vmatprep.mubr.msk.bf16.mxu0 %vm457_vm0, %v6406_v10  ;;  %v3912_v10 = vld [vmem:[%s6895_s8 + $0x8] sm:$0xff] }
 0x445   : > { %4751 = vmatmul.mubr.msk.bf16.gmra.mrb[32].mxu1 %vm457_vm0, %v6536_v22 }
 0x446   : > { %4754 = vmatprep.mubr.msk.bf16.mxu1 %vm457_vm0, %v6546_v16 }
 0x447   : > { %4901 = vmatmul.mubr.msk.bf16.gmra.mrb[8].mxu0 %vm457_vm0, %v6410_v20  ;;  %v4940_v20 = vpack.c.bf16 %v3912_v10, %v3911_v58 }
 0x448   : > { %4904 = vmatprep.mubr.msk.bf16.mxu0 %vm457_vm0, %v6420_v18  ;;  %v3913_v18 = vld [vmem:[%s6895_s8 + $0x10] sm:$0xff] }
 0x44d   : > { %4755 = vmatmul.mubr.msk.bf16.gmra.mrb[36].mxu1 %vm457_vm0, %v6589_v43 }
 0x44e   : > { %4780 = vmatprep.mubr.msk.bf16.mxu1 %vm457_vm0, %v6375_v45  ;;  %v3914_v45 = vld [vmem:[%s6895_s8 + $0x18] sm:$0xff] }
 0x44f   : > { %4905 = vmatmul.mubr.msk.bf16.gmra.mrb[12].mxu0 %vm457_vm0, %v6422_v63  ;;  %v5395_v63 = vpop.eup %5394  ;;  %v4943_v39 = vpack.c.bf16 %v3914_v45, %v3913_v18 }
 0x450   : > { %4908 = vmatprep.mubr.msk.bf16.mxu0 %vm457_vm0, %v6442_v31  ;;  %v3907_v38 = vadd.f32 1.0, %v5395_v63  ;;  %v3640_v31 = vld [vmem:[#allocation2 + $0x1a2] sm:$0xff] }
 0x452   : > { %5396 = vrcp.f32 %v3907_v38 }
 0x455   : > { %4781 = vmatmul.mubr.msk.bf16.vlgmr.msra.gmra.mrb[28].mxu1 %vm457_vm0, %v6377_v46 }
 0x456   : > { %4941 = vmatpush3.bf16.msra.mxu1 %v4940_v20  ;;  %4784 = vmatprep.mubr.msk.bf16.mxu1 %vm457_vm0, %v6400_v53  ;;  %v6928_v53 = vmov 0.0  }
 0x457   : > { %4909 = vmatmul.mubr.msk.bf16.gmra.mrb[16].mxu0 %vm457_vm0, %v6446_v12  ;;  %4942 = vmatprep.subr.bf16.mxu1 %v5500_v42 }
 0x458   : > { %4912 = vmatprep.mubr.msk.bf16.mxu0 %vm457_vm0, %v6460_v0 }
 0x45a   : > { %4944 = vmatpush3.bf16.msra.mxu1 %v4943_v39 }
 0x45c   : > { %v5397_v46 = vpop.eup %5396 }
 0x45d   : > { %4785 = vmatmul.mubr.msk.bf16.gmra.mrb[32].mxu1 %vm457_vm0, %v6402_v56  ;;  %v3910_v56 = vmul.f32 %v5397_v46, %v3903_v24 }
 0x45e   : > { %4788 = vmatprep.mubr.msk.bf16.mxu1 %vm457_vm0, %v6416_v50  ;;  %v3639_v50 = vld [vmem:[#allocation2 + $0x19a] sm:$0xff] }
 0x45f   : > { %4913 = vmatmul.mubr.msk.bf16.gmra.mrb[20].mxu0 %vm457_vm0, %v6464_v40  ;;  %v3656_v12 = vpack.c.bf16 %v3640_v31, %v3639_v50 }
 0x460   : > { %4916 = vmatprep.mubr.msk.bf16.mxu0 %vm457_vm0, %v6476_v34 }
 0x465   : > { %4789 = vmatmul.mubr.msk.bf16.gmra.mrb[36].mxu1 %vm457_vm0, %v3361_v61 }
 0x466   : > { %4936 = vmatprep.mubr.msk.f32.mxu1 %vm5499_vm2, %v6928_v53 }
 0x467   : > { %4917 = vmatmul.mubr.msk.bf16.gmra.mrb[24].mxu0 %vm457_vm0, %v6480_v3 }
 0x468   : > { %4920 = vmatprep.mubr.msk.bf16.mxu0 %vm457_vm0, %v6492_v17 }
 0x46d   : > { %4937 = vmatmul.mubr.msk.f32.vlgmr.msra.gmra.mrb[6].mxu1 %vm3916_vm4, %v3910_v56 }
 0x46f   : > { %4921 = vmatmul.mubr.msk.bf16.gmra.mrb[28].mxu0 %vm457_vm0, %v6496_v9 }
 0x470   : > { %4924 = vmatprep.mubr.msk.bf16.mxu0 %vm457_vm0, %v6508_v48 }
 0x477   : > { %4925 = vmatmul.mubr.msk.bf16.gmra.mrb[32].mxu0 %vm457_vm0, %v3656_v12  ;;  %v6758_v12 = vld [vmem:[%s6893_s6] ss:$0 sm:$0xff] }
 0x4e8   : > { %v4728_v23 = vpop.f32.mrb[8].mxu1 }
 0x4e9   : > { %v2273_v29 = vpop.f32.mrb[9].mxu1 }
 0x4ea   : > { %v4729_v0 = vpop.f32.mrb[10].mxu1 }
 0x4eb   : > { %v2276_v40 = vpop.f32.mrb[11].mxu1 }
 0x4f0   : > { %v4732_v62 = vpop.f32.mrb[12].mxu1 }
 0x4f1   : > { %v2289_v11 = vpop.f32.mrb[13].mxu1 }
 0x4f2   : > { %v4733_v34 = vpop.f32.mrb[14].mxu1 }
 0x4f3   : > { %v2292_v3 = vpop.f32.mrb[15].mxu1 }
 0x4f8   : > { %v4736_v6 = vpop.f32.mrb[16].mxu1 }
 0x4f9   : > { %v2305_v13 = vpop.f32.mrb[17].mxu1 }
 0x4fa   : > { %v4737_v17 = vpop.f32.mrb[18].mxu1 }
 0x4fb   : > { %v2308_v9 = vpop.f32.mrb[19].mxu1 }
 0x500   : > { %v4740_v1 = vpop.f32.mrb[20].mxu1 }
 0x501   : > { %v2321_v2 = vpop.f32.mrb[21].mxu1 }
 0x502   : > { %v4741_v48 = vpop.f32.mrb[22].mxu1 }
 0x503   : > { %v2324_v37 = vpop.f32.mrb[23].mxu1 }
 0x508   : > { %v4744_v55 = vpop.f32.mrb[24].mxu1 }
 0x509   : > { %v2337_v57 = vpop.f32.mrb[25].mxu1 }
 0x50a   : > { %v4745_v28 = vpop.f32.mrb[26].mxu1 }
 0x50b   : > { %v2340_v59 = vpop.f32.mrb[27].mxu1 }
 0x512   : > { %v4898_v14 = vpop.f32.mrb[4].mxu0 }
 0x513   : > { %v6735_v21 = vadd.f32 %v4898_v14, %v4728_v23  ;;  %v3744_v8 = vpop.f32.mrb[5].mxu0 }
 0x514   : > { %v6737_v27 = vadd.f32 %v3744_v8, %v2273_v29  ;;  %v4899_v22 = vpop.f32.mrb[6].mxu0 }
 0x515   : > { %v6739_v5 = vadd.f32 %v4899_v22, %v4729_v0  ;;  %v3747_v15 = vpop.f32.mrb[7].mxu0 }
 0x516   : > { %v6741_v26 = vadd.f32 %v3747_v15, %v2276_v40  ;;  %v3915_v15 = vld [vmem:[%s6896_s9] sm:$0x1] }
 0x51a   : > { %v4902_v33 = vpop.f32.mrb[8].mxu0 }
 0x51b   : > { %v6743_v47 = vadd.f32 %v4902_v33, %v4732_v62  ;;  %v3760_v16 = vpop.f32.mrb[9].mxu0  ;;  %v3999_v33 = vadd.f32 %v6735_v21, %v6758_v12 }
 0x51c   : > { %v6745_v32 = vadd.f32 %v3760_v16, %v2289_v11  ;;  %v4903_v36 = vpop.f32.mrb[10].mxu0 }
 0x51d   : > { %v6747_v7 = vadd.f32 %v4903_v36, %v4733_v34  ;;  %v3763_v41 = vpop.f32.mrb[11].mxu0  ;;  %v4000_v36 = vadd.f32 %v6739_v5, %v6758_v12 }
 0x51e   : > { %v6749_v43 = vadd.f32 %v3763_v41, %v2292_v3  ;;  %v3998_v41 = vadd.f32 %v6741_v26, %v6758_v12  ;;  %v4001_v21 = vadd.f32 %v6745_v32, %v6758_v12 }
 0x520   : > { %v4002_v26 = vadd.f32 %v6749_v43, %v6758_v12 }
 0x522   : > { %v4906_v49 = vpop.f32.mrb[12].mxu0 }
 0x523   : > { %v6751_v25 = vadd.f32 %v4906_v49, %v4736_v6  ;;  %v3776_v52 = vpop.f32.mrb[13].mxu0 }
 0x524   : > { %v6753_v35 = vadd.f32 %v3776_v52, %v2305_v13  ;;  %v4907_v19 = vpop.f32.mrb[14].mxu0 }
 0x525   : > { %v4957_v42 = vadd.f32 %v4907_v19, %v4737_v17  ;;  %v3779_v51 = vpop.f32.mrb[15].mxu0  ;;  %v3997_v19 = vadd.f32 %v6737_v27, %v6758_v12 }
 0x526   : > { %v4958_v54 = vadd.f32 %v3779_v51, %v2308_v9  ;;  %v4003_v51 = vadd.f32 %v6743_v47, %v6758_v12  ;;  %v4005_v27 = vadd.f32 %v6753_v35, %v6758_v12 }
 0x528   : > { %v4782_v61 = vpop.f32.mrb[28].mxu1 }
 0x529   : > { %v2647_v30 = vpop.f32.mrb[29].mxu1 }
 0x52a   : > { %v4910_v44 = vpop.f32.mrb[16].mxu0  ;;  %v4783_v4 = vpop.f32.mrb[30].mxu1 }
 0x52b   : > { %v4959_v24 = vadd.f32 %v4910_v44, %v4740_v1  ;;  %v3792_v60 = vpop.f32.mrb[17].mxu0  ;;  %v2650_v58 = vpop.f32.mrb[31].mxu1  ;;  %v4007_v44 = vadd.f32 %v6751_v25, %v6758_v12 }
 0x52c   : > { %v4960_v10 = vadd.f32 %v3792_v60, %v2321_v2  ;;  %v4911_v20 = vpop.f32.mrb[18].mxu0  ;;  %v4006_v60 = vadd.f32 %v4958_v54, %v6758_v12 }
 0x52d   : > { %v4961_v18 = vadd.f32 %v4911_v20, %v4741_v48  ;;  %v3795_v45 = vpop.f32.mrb[19].mxu0  ;;  %v4011_v32 = vadd.f32 %v4959_v24, %v6758_v12 }
 0x52e   : > { %v4962_v63 = vadd.f32 %v3795_v45, %v2324_v37 }
 0x52f   : > { %v4012_v43 = vadd.f32 %v4961_v18, %v6758_v12 }
 0x530   : > { %v4786_v39 = vpop.f32.mrb[32].mxu1  ;;  %v4010_v25 = vadd.f32 %v4962_v63, %v6758_v12 }
 0x531   : > { %v2663_v38 = vpop.f32.mrb[33].mxu1 }
 0x532   : > { %v4914_v46 = vpop.f32.mrb[20].mxu0  ;;  %v4787_v53 = vpop.f32.mrb[34].mxu1 }
 0x533   : > { %v4963_v56 = vadd.f32 %v4914_v46, %v4744_v55  ;;  %v3808_v50 = vpop.f32.mrb[21].mxu0  ;;  %v2666_v31 = vpop.f32.mrb[35].mxu1  ;;  %v4009_v46 = vadd.f32 %v4960_v10, %v6758_v12 }
 0x534   : > { %v4964_v23 = vadd.f32 %v3808_v50, %v2337_v57  ;;  %v4915_v29 = vpop.f32.mrb[22].mxu0 }
 0x535   : > { %v6761_v0 = vadd.f32 %v4963_v56, %v6758_v12  ;;  %v4965_v40 = vadd.f32 %v4915_v29, %v4745_v28  ;;  %v3811_v62 = vpop.f32.mrb[23].mxu0 }
 0x536   : > { %v6764_v11 = vadd.f32 %v4964_v23, %v6758_v12  ;;  %v4966_v34 = vadd.f32 %v3811_v62, %v2340_v59 }
 0x537   : > { %v6767_v3 = vadd.f32 %v4965_v40, %v6758_v12 }
 0x538   : > { %v6770_v6 = vadd.f32 %v4966_v34, %v6758_v12  ;;  %v6772_v13 = vpop.f32.mrb[36].mxu1 }
 0x539   : > { %v6774_v17 = vpop.f32.mrb[37].mxu1 }
 0x53a   : > { %v4918_v9 = vpop.f32.mrb[24].mxu0  ;;  %v6776_v1 = vpop.f32.mrb[38].mxu1 }
 0x53b   : > { %v4967_v2 = vadd.f32 %v4918_v9, %v4782_v61  ;;  %v3824_v48 = vpop.f32.mrb[25].mxu0  ;;  %v6778_v37 = vpop.f32.mrb[39].mxu1  ;;  %v4004_v61 = vadd.f32 %v6747_v7, %v6758_v12 }
 0x53c   : > { %v4968_v55 = vadd.f32 %v3824_v48, %v2647_v30  ;;  %v4919_v57 = vpop.f32.mrb[26].mxu0 }
 0x53d   : > { %v6781_v28 = vadd.f32 %v4967_v2, %v6758_v12  ;;  %v4969_v59 = vadd.f32 %v4919_v57, %v4783_v4  ;;  %v3827_v14 = vpop.f32.mrb[27].mxu0  ;;  %v4008_v4 = vadd.f32 %v4957_v42, %v6758_v12 }
 0x53e   : > { %v4017_v8 = vadd.f32 %v4968_v55, %v6758_v12  ;;  %v4970_v22 = vadd.f32 %v3827_v14, %v2650_v58  ;;  %v6929_v58 = vld [vmem:[#allocation11_spill] sm:$0xff] }
 0x53f   : > { %v6790_v16 = vadd.f32 %v4969_v59, %v6758_v12 }
 0x540   : > { %v4018_v49 = vadd.f32 %v4970_v22, %v6758_v12  ;;  %v3986_v52 = vpop.f32.mrb[6].mxu1 }
 0x541   : > { %v3987_v30 = vadd.f32 %v3986_v52, %v3915_v15  ;;  %v4938_v5 = vpop.f32.mrb[7].mxu1 }
 0x542   : > { %v4922_v47 = vpop.f32.mrb[28].mxu0 }
 0x543   : > { %v4032_v7 = vrot.slane %v3987_v30, %v6929_v58  ;;  %v4971_v20 = vadd.f32 %v4922_v47, %v4786_v39  ;;  %v3840_v45 = vpop.f32.mrb[29].mxu0 }
 0x544   : > { %v4972_v56 = vadd.f32 %v3840_v45, %v2663_v38  ;;  %v4923_v50 = vpop.f32.mrb[30].mxu0 }
 0x545   : > { %v4023_v35 = vadd.f32 %v4971_v20, %v6758_v12  ;;  %v4973_v42 = vadd.f32 %v4923_v50, %v4787_v53  ;;  %v3843_v23 = vpop.f32.mrb[31].mxu0  ;;  %v4033_v29 = vadd.f32 %v4032_v7, %v3997_v19  ;;  %v4034_v54 = vadd.f32 %v4032_v7, %v3998_v41 }
 0x546   : > { %v4021_v24 = vadd.f32 %v4972_v56, %v6758_v12  ;;  %v4974_v40 = vadd.f32 %v3843_v23, %v2666_v31  ;;  %v4035_v62 = vadd.f32 %v4032_v7, %v3999_v33  ;;  %v4036_v39 = vadd.f32 %v4032_v7, %v4000_v36 }
 0x547   : > { %v4024_v34 = vadd.f32 %v4973_v42, %v6758_v12  ;;  %4065 = vxpose.xlu1.b32.start [1/16] (narrow) %v4033_v29, 16  ;;  %v4037_v10 = vadd.f32 %v4032_v7, %v4001_v21  ;;  %v4038_v18 = vadd.f32 %v4032_v7, %v4002_v26  ;;  %v4039_v9 = vadd.f32 %v4032_v7, %v4003_v51 }
 0x548   : > { %v4022_v63 = vadd.f32 %v4974_v40, %v6758_v12  ;;  %v4040_v38 = vadd.f32 %v4032_v7, %v4004_v61  ;;  %v4041_v2 = vadd.f32 %v4032_v7, %v4005_v27  ;;  %v4042_v48 = vadd.f32 %v4032_v7, %v4006_v60 }
 0x549   : > { %v4043_v53 = vadd.f32 %v4032_v7, %v4007_v44  ;;  %v4044_v55 = vadd.f32 %v4032_v7, %v4008_v4  ;;  %v4045_v57 = vadd.f32 %v4032_v7, %v4009_v46  ;;  %v4046_v59 = vadd.f32 %v4032_v7, %v4010_v25 }
 0x54a   : > { %v4926_v14 = vpop.f32.mrb[32].mxu0  ;;  %v4047_v22 = vadd.f32 %v4032_v7, %v4011_v32  ;;  %v4048_v31 = vadd.f32 %v4032_v7, %v4012_v43  ;;  %v4049_v15 = vadd.f32 %v4032_v7, %v6764_v11  ;;  %v4050_v33 = vadd.f32 %v4032_v7, %v6770_v6 }
 0x54b   : > { %v4975_v36 = vadd.f32 %v4926_v14, %v6772_v13  ;;  %v3856_v41 = vpop.f32.mrb[33].mxu0  ;;  %4066 = vxpose.xlu1.b32.cont [2/16] (narrow) %v4034_v54, 16  ;;  %v4051_v52 = vadd.f32 %v4032_v7, %v6761_v0  ;;  %v4052_v19 = vadd.f32 %v4032_v7, %v6767_v3  ;;  %v4053_v51 = vadd.f32 %v4032_v7, %v4017_v8 }
 0x54c   : > { %v4976_v21 = vadd.f32 %v3856_v41, %v6774_v17  ;;  %v4927_v61 = vpop.f32.mrb[34].mxu0  ;;  %v4054_v30 = vadd.f32 %v4032_v7, %v4018_v49  ;;  %v4055_v5 = vadd.f32 %v4032_v7, %v6781_v28  ;;  %v4056_v26 = vadd.f32 %v4032_v7, %v6790_v16 }
 0x54d   : > { %v4027_v11 = vadd.f32 %v4975_v36, %v6758_v12  ;;  %v4977_v6 = vadd.f32 %v4927_v61, %v6776_v1  ;;  %v3859_v13 = vpop.f32.mrb[35].mxu0  ;;  %v4057_v44 = vadd.f32 %v4032_v7, %v4021_v24  ;;  %v4058_v27 = vadd.f32 %v4032_v7, %v4022_v63 }
 0x54e   : > { %v4025_v0 = vadd.f32 %v4976_v21, %v6758_v12  ;;  %v4978_v3 = vadd.f32 %v3859_v13, %v6778_v37  ;;  %v4059_v8 = vadd.f32 %v4032_v7, %v4023_v35  ;;  %v4060_v4 = vadd.f32 %v4032_v7, %v4024_v34 }
 0x54f   : > { %v4028_v17 = vadd.f32 %v4977_v6, %v6758_v12  ;;  %4067 = vxpose.xlu1.b32.cont [3/16] (narrow) %v4035_v62, 16  ;;  %v4063_v49 = vadd.f32 %v4032_v7, %v4027_v11 }
 0x550   : > { %v4026_v28 = vadd.f32 %v4978_v3, %v6758_v12  ;;  %v4061_v16 = vadd.f32 %v4032_v7, %v4025_v0 }
 0x551   : > { %v4064_v47 = vadd.f32 %v4032_v7, %v4028_v17 }
 0x552   : > { %v4062_v60 = vadd.f32 %v4032_v7, %v4026_v28 }
 0x553   : > { %4068 = vxpose.xlu1.b32.cont [4/16] (narrow) %v4036_v39, 16 }
 0x557   : > { %4069 = vxpose.xlu1.b32.cont [5/16] (narrow) %v4037_v10, 16 }
 0x55b   : > { %4070 = vxpose.xlu1.b32.cont [6/16] (narrow) %v4038_v18, 16 }
 0x55f   : > { %4071 = vxpose.xlu1.b32.cont [7/16] (narrow) %v4039_v9, 16 }
 0x563   : > { %4072 = vxpose.xlu1.b32.cont [8/16] (narrow) %v4040_v38, 16 }
 0x567   : > { %4073 = vxpose.xlu1.b32.cont [9/16] (narrow) %v4041_v2, 16 }
 0x56b   : > { %4074 = vxpose.xlu1.b32.cont [10/16] (narrow) %v4042_v48, 16 }
 0x56f   : > { %4075 = vxpose.xlu1.b32.cont [11/16] (narrow) %v4043_v53, 16 }
 0x573   : > { %4076 = vxpose.xlu1.b32.cont [12/16] (narrow) %v4044_v55, 16 }
 0x577   : > { %4077 = vxpose.xlu1.b32.cont [13/16] (narrow) %v4045_v57, 16 }
 0x57b   : > { %4078 = vxpose.xlu1.b32.cont [14/16] (narrow) %v4046_v59, 16 }
 0x57f   : > { %4079 = vxpose.xlu1.b32.cont [15/16] (narrow) %v4047_v22, 16 }
 0x583   : > { %4080 = vxpose.xlu1.b32.end [16/16] (narrow) %v4048_v31, 16 }
 0x587   : > { %4097 = vxpose.xlu1.b32.start [1/16] (narrow) %v4049_v15, 16 }
 0x58b   : > { %4098 = vxpose.xlu1.b32.cont [2/16] (narrow) %v4050_v33, 16 }
 0x58f   : > { %4099 = vxpose.xlu1.b32.cont [3/16] (narrow) %v4051_v52, 16 }
 0x593   : > { %4100 = vxpose.xlu1.b32.cont [4/16] (narrow) %v4052_v19, 16 }
 0x597   : > { %4101 = vxpose.xlu1.b32.cont [5/16] (narrow) %v4053_v51, 16 }
 0x59b   : > { %4102 = vxpose.xlu1.b32.cont [6/16] (narrow) %v4054_v30, 16 }
 0x59f   : > { %4103 = vxpose.xlu1.b32.cont [7/16] (narrow) %v4055_v5, 16 }
 0x5a3   : > { %4104 = vxpose.xlu1.b32.cont [8/16] (narrow) %v4056_v26, 16 }
 0x5a7   : > { %4105 = vxpose.xlu1.b32.cont [9/16] (narrow) %v4057_v44, 16 }
 0x5ab   : > { %4106 = vxpose.xlu1.b32.cont [10/16] (narrow) %v4058_v27, 16 }
 0x5af   : > { %4107 = vxpose.xlu1.b32.cont [11/16] (narrow) %v4059_v8, 16 }
 0x5b3   : > { %4108 = vxpose.xlu1.b32.cont [12/16] (narrow) %v4060_v4, 16 }
 0x5b7   : > { %4109 = vxpose.xlu1.b32.cont [13/16] (narrow) %v4061_v16, 16 }
 0x5bb   : > { %4110 = vxpose.xlu1.b32.cont [14/16] (narrow) %v4062_v60, 16 }
 0x5bf   : > { %4111 = vxpose.xlu1.b32.cont [15/16] (narrow) %v4063_v49, 16 }
 0x5c3   : > { %4112 = vxpose.xlu1.b32.end [16/16] (narrow) %v4064_v47, 16 }
 0x5c7   : > { %v4081_v12 = vpop.trf.xlu1 }
 0x5c8   : > { %4129 = vst [vmem:[%s386_s12] sm:$0xff] %v4081_v12 }
 0x5cb   : > { %v4082_v1 = vpop.trf.xlu1 }
 0x5cc   : > { %4131 = vst [vmem:[%s386_s12 + $0x10] sm:$0xff] %v4082_v1 }
 0x607   : > { %v4113_v37 = vpop.trf.xlu1 }
 0x608   : > { %4130 = vst [vmem:[%s386_s12 + $0x8] sm:$0xff] %v4113_v37 }
 0x60b   : > { %v4114_v32 = vpop.trf.xlu1 }
 0x60c   : > { %4132 = vst [vmem:[%s386_s12 + $0x18] sm:$0xff] %v4114_v32 }
 0x60d   : > { %5442 = shalt.err (!%p5439_p5)
}
 0x60e   : > { %s5443_s24 = scalar_lea.hbm %s6843_s29, 512  ;;  %s5447_s30 = scalar_lea.hbm %s6897_s10, 1024 }
 0x60f   : > { %p5444_p8 = scmp.ne.s32.totalorder %s6843_s29, %s5443_s24  ;;  %p5448_p1 = scmp.lt.u32.totalorder %s6843_s29, %s6897_s10 }
 0x610   : > { %p5449_p3 = scmp.lt.u32.totalorder %s5447_s30, %s5443_s24  ;;  %p5451_p11 = scmp.lt.u32.totalorder %s5443_s24, %s6843_s29 }
 0x611   : > { %p5445_p9 = pnand %p5444_p8, %p6930_p12 }
 0x612   : > { %p5450_p6 = por %p5449_p3, %p5448_p1 }
 0x613   : > { %p5446_p0 = pneg %p5445_p9 }
 0x614   : > { %p5452_p13 = por %p5451_p11, %p5450_p6 }
 0x616   : > { %p5453_p7 = pnand %p5452_p13, %p5446_p0 }
 0x618   : > { %5456 = shalt.err (!%p5453_p7)
}
 0x619   : > { %s5502_s11 = smov 256   ;;  %s5503_s18 = smov 16  }
 0x61a   : > { %5215 = dma.vmem_to_hbm [thread:$0]  (%p6930_p12), %s6838_s20, 512, %s6843_s29, %s4134_s22, %s5502_s11, %s5502_s11, %s5503_s18  }
 0x61b PF: > { %s4162_s27 = sand.u32 1, %s5483_s13   ;;  %p6931_p10 = scmp.ne.s32.totalorder %s6911_s26, 0 }
 0x61c   : > { %p6932_p2 = scmp.ge.s32.totalorder %s5495_s16, 2  ;;  %s4163_s24 = scalar_lea.sflag [#allocation5], %s4162_s27 }
 0x61e   : > { %p5222_p4 = pnand %p6932_p2, %p6931_p10 }
 0x620   : > { %5478 = dma.done.wait (!%p5222_p4), %s4163_s24, 512  }
 0x621   : > { %5480 = vsyncadd (!%p5222_p4), %s4163_s24, 4294966784  ;;  %s6933_s12 = sld [smem:[#allocation9_spill]]  ;;  %p23_p5 = scmp.ge.s32.totalorder %s5584_s19, 4  }
 0x622   : > { %s6934_s13 = smov %s5487_s14  ;;  %s6935_s14 = smov %s5491_s15 }
 0x623   : > { %s6937_s16 = smov %s5584_s19  ;;  %25 = sbr.rel (!%p23_p5) target bundleno = 5 (0x5), region = 118 }
 0x627   : > { %s6936_s15 = smov %s6933_s12 }
 0x62a   :  { %4168 = vsyncpa [#allocation4], 1 }
 0x62b   :  { %4170 = vsyncpa [#allocation4 + $0x1], 1 }
 0x62c   :  { %4171 = vsyncpa [#allocation5], 1 }
 0x62d   :  { %4173 = vsyncpa [#allocation5 + $0x1], 1 }

</bundles_post_ra>
